<compile_context>
chip_gen: v7x
topology: tpu7x:2x2x1
jax: 0.10.0
libtpu: 0.0.40
codegen_flags: <defaults>
</compile_context>

<pallas_src>
import functools

import jax
import jax.numpy as jnp
from jax.experimental import pallas as pl
from jax.experimental.pallas import tpu as pltpu

# ---------------------------------------------------------------------------
# Model hyper-parameters (small, synthetic)
# ---------------------------------------------------------------------------
B = 2            # batch
T_RAW = 165      # raw waveform samples
CONV0_K, CONV0_S, CONV0_C = 10, 5, 32     # (165-10)//5+1 = 32 frames
CONV1_K, CONV1_S, CONV1_C = 2, 2, 32      # (32-2)//2+1   = 16 frames
D = 64           # hidden size
H = 4            # attention heads
DH = D // H      # head dim = 16
FFN = 128        # feed-forward dim
VOCAB = 32       # vocab size (logits)
VOCAB_PAD = 128  # lane-dense padded head width
K0PAD = 16       # conv0 patch width padded 10 -> 16
LN_EPS = 1e-5


def conv_out_len(length, kernel, stride):
    return (length - kernel) // stride + 1


T0 = conv_out_len(T_RAW, CONV0_K, CONV0_S)       # 32 conv0 frames
T_FEAT = conv_out_len(T0, CONV1_K, CONV1_S)      # 16 encoder frames
assert T0 == CONV1_K * T_FEAT                    # stride==kernel pairing

# ---------------------------------------------------------------------------
# Packed-slab layouts (static, shared by pack_params and the kernel)
# ---------------------------------------------------------------------------
_W_ENTRIES = [              # (name, rows, cols) of each matmul weight
    ("w0",   2 * K0PAD,        2 * CONV0_C),   # block-diag conv0
    ("w1",   CONV1_K * CONV0_C, CONV1_C),      # conv1
    ("wfp",  CONV1_C,           D),            # feature projection
    ("wqkv", D,                 3 * D),        # fused QKV (scale folded in Q)
    ("wo",   D,                 D),            # attn out-proj
    ("wf1",  D,                 FFN),          # FFN up
    ("wf2",  FFN,               D),            # FFN down
    ("wh",   D,                 VOCAB_PAD),    # LM head (lane-padded)
]
W_COLS = 3 * D                                 # 192, max width
W_LAYOUT = {}
_off = 0
for _name, _r, _c in _W_ENTRIES:
    W_LAYOUT[_name] = (_off, _r, _c)
    _off += _r
W_ROWS = _off                                  # 512

_B_ENTRIES = [              # (name, width) of each bias / LN row vector
    ("b0", 2 * CONV0_C), ("b1", CONV1_C),
    ("fplg", CONV1_C), ("fplb", CONV1_C), ("bfp", D),
    ("ln1g", D), ("ln1b", D), ("bqkv", 3 * D), ("bo", D),
    ("ln2g", D), ("ln2b", D), ("bf1", FFN), ("bf2", D),
    ("lnfg", D), ("lnfb", D), ("bh", VOCAB_PAD),
]
B_INDEX = {name: i for i, (name, _) in enumerate(_B_ENTRIES)}
B_WIDTH = {name: w for name, w in _B_ENTRIES}
B_ROWS = len(_B_ENTRIES)                       # 16


# ---------------------------------------------------------------------------
# The single fused Pallas kernel
# ---------------------------------------------------------------------------
def _wav2vec2_kernel(patches_ref, mask_ref, wslab_ref, bslab_ref,
                     out_ref, attn_ref):
    f32 = jnp.float32
    bf16 = jnp.bfloat16

    def wgt(name):
        off, r, c = W_LAYOUT[name]
        return wslab_ref[off:off + r, 0:c]          # static sub-block of slab

    def brow(name):
        i = B_INDEX[name]
        return bslab_ref[i:i + 1, 0:B_WIDTH[name]]  # (1, width) f32 row

    def mm(x, wname, bname):
        # bf16 MXU operands, f32 accumulate, f32 bias epilogue.
        return jnp.dot(x.astype(bf16), wgt(wname),
                       preferred_element_type=f32) + brow(bname)

    def ln(x, gname, bname):
        mu = jnp.mean(x, axis=-1, keepdims=True)
        var = jnp.mean(jnp.square(x - mu), axis=-1, keepdims=True)
        return (x - mu) * jax.lax.rsqrt(var + LN_EPS) * brow(gname) + brow(bname)

    # TODO(synk): PyTorch nn.GELU defaults to exact erf; tanh approximation is
    # used here (EUP-friendly), numerically very close.
    gelu = functools.partial(jax.nn.gelu, approximate=True)

    # --- conv feature extractor (both convs fused) ---
    # patches: (B*T_FEAT, 2*K0PAD) bf16; w0 is block-diagonal over the (k=2,
    # s=2) frame pair, so its output *is* the conv1 im2col input.
    h = gelu(mm(patches_ref[...], "w0", "b0"))       # (B*T, 64)
    h = gelu(mm(h, "w1", "b1"))                      # (B*T, 32)

    # --- feature projection ---
    h = ln(h, "fplg", "fplb")
    x = mm(h, "wfp", "bfp")                          # (B*T, D)

    # --- transformer encoder layer (pre-LN) ---
    hn = ln(x, "ln1g", "ln1b")
    qkv = mm(hn, "wqkv", "bqkv").astype(bf16)        # (B*T, 3D), cast once
    q = qkv[:, 0:D]
    k = qkv[:, D:2 * D]
    v = qkv[:, 2 * D:3 * D]

    # Per-(batch, head) attention; head outputs go straight into a VMEM
    # scratch at static offsets (no concatenates, bounded live ranges).
    for bi in range(B):                              # static unroll (B=2)
        r0 = bi * T_FEAT
        mask_b = mask_ref[bi, :, :]                  # (T, T), hoisted
        q_b = q[r0:r0 + T_FEAT, :]                   # (T, D) bf16
        v_b = v[r0:r0 + T_FEAT, :]
        kT_b = k[r0:r0 + T_FEAT, :].T                # (D, T): one transpose/batch
        for hh in range(H):                          # static unroll (H=4)
            c0 = hh * DH
            # scale 1/sqrt(DH) is folded into the Q weights at pack time
            s = jnp.dot(q_b[:, c0:c0 + DH], kT_b[c0:c0 + DH, :],
                        preferred_element_type=f32)  # (T, T)
            s = s + mask_b                           # key-padding mask
            m = jnp.max(s, axis=-1, keepdims=True)
            p = jnp.exp(s - m)
            p = p * pl.reciprocal(jnp.sum(p, axis=-1, keepdims=True),
                                  approx=True)
            o = jnp.dot(p.astype(bf16), v_b[:, c0:c0 + DH],
                        preferred_element_type=f32)  # (T, DH)
            attn_ref[r0:r0 + T_FEAT, c0:c0 + DH] = o

    x = x + mm(attn_ref[...], "wo", "bo")            # residual 1 (fused)

    hn = ln(x, "ln2g", "ln2b")
    f = gelu(mm(hn, "wf1", "bf1"))                   # (B*T, FFN)
    x = x + mm(f, "wf2", "bf2")                      # residual 2 (fused)

    # --- final LN + LM head (lane-padded to 128 => unmasked vst) ---
    hn = ln(x, "lnfg", "lnfb")
    logits = mm(hn, "wh", "bh")                      # (B*T, 128)
    out_ref[...] = logits.reshape(B, T_FEAT, VOCAB_PAD)


# ---------------------------------------------------------------------------
# Parameter init (reference layout) + packing into two kernel-ready slabs
# ---------------------------------------------------------------------------
def init_params(key):
    def lin(k, fan_in, fan_out):
        w = jax.random.normal(k, (fan_in, fan_out), jnp.float32) / jnp.sqrt(fan_in)
        return w, jnp.zeros((fan_out,), jnp.float32)

    keys = jax.random.split(key, 12)
    p = {}
    # conv weights already in (k*C_in, C_out) matmul form
    p["conv0_w"], p["conv0_b"] = lin(keys[0], CONV0_K * 1, CONV0_C)
    p["conv1_w"], p["conv1_b"] = lin(keys[1], CONV1_K * CONV0_C, CONV1_C)
    # feature projection
    p["fp_ln_g"] = jnp.ones((CONV1_C,), jnp.float32)
    p["fp_ln_b"] = jnp.zeros((CONV1_C,), jnp.float32)
    p["fp_w"], p["fp_b"] = lin(keys[2], CONV1_C, D)
    # transformer encoder layer (pre-LN)
    p["ln1_g"] = jnp.ones((D,), jnp.float32)
    p["ln1_b"] = jnp.zeros((D,), jnp.float32)
    p["wq"], p["bq"] = lin(keys[3], D, D)
    p["wk"], p["bk"] = lin(keys[4], D, D)
    p["wv"], p["bv"] = lin(keys[5], D, D)
    p["wo"], p["bo"] = lin(keys[6], D, D)
    p["ln2_g"] = jnp.ones((D,), jnp.float32)
    p["ln2_b"] = jnp.zeros((D,), jnp.float32)
    p["ff1_w"], p["ff1_b"] = lin(keys[7], D, FFN)
    p["ff2_w"], p["ff2_b"] = lin(keys[8], FFN, D)
    # final LN + LM head
    p["lnf_g"] = jnp.ones((D,), jnp.float32)
    p["lnf_b"] = jnp.zeros((D,), jnp.float32)
    p["head_w"], p["head_b"] = lin(keys[9], D, VOCAB)
    return p


def pack_params(p):
    """Pre-pack everything into two slabs:
       * wslab (W_ROWS, 192) bf16 : all matmul weights (conv0 block-diag,
         fused QKV with 1/sqrt(DH) folded into Q, lane-padded LM head)
       * bslab (16, 192) f32      : all bias / LayerNorm row vectors
    """
    f32, bf16 = jnp.float32, jnp.bfloat16

    # conv0: pad K 10->16, then block-diagonal over the (k=2,s=2) frame pair so
    # conv1's unfold is the identity on the conv0 output.
    w0 = jnp.zeros((K0PAD, CONV0_C), f32).at[:CONV0_K].set(p["conv0_w"])
    w0bd = jnp.zeros((2 * K0PAD, 2 * CONV0_C), f32)
    w0bd = w0bd.at[:K0PAD, :CONV0_C].set(w0).at[K0PAD:, CONV0_C:].set(w0)
    b0t = jnp.concatenate([p["conv0_b"], p["conv0_b"]])

    # fused QKV, attention scale folded into the Q block
    scale = 1.0 / (DH ** 0.5)
    wqkv = jnp.concatenate([p["wq"] * scale, p["wk"], p["wv"]], axis=1)  # (D,3D)
    bqkv = jnp.concatenate([p["bq"] * scale, p["bk"], p["bv"]])

    # LM head padded to 128 lanes (zeros beyond VOCAB; sliced off in wrapper)
    wh = jnp.zeros((D, VOCAB_PAD), f32).at[:, :VOCAB].set(p["head_w"])
    bh = jnp.zeros((VOCAB_PAD,), f32).at[:VOCAB].set(p["head_b"])

    weights = dict(w0=w0bd, w1=p["conv1_w"], wfp=p["fp_w"], wqkv=wqkv,
                   wo=p["wo"], wf1=p["ff1_w"], wf2=p["ff2_w"], wh=wh)
    biases = dict(b0=b0t, b1=p["conv1_b"],
                  fplg=p["fp_ln_g"], fplb=p["fp_ln_b"], bfp=p["fp_b"],
                  ln1g=p["ln1_g"], ln1b=p["ln1_b"], bqkv=bqkv, bo=p["bo"],
                  ln2g=p["ln2_g"], ln2b=p["ln2_b"],
                  bf1=p["ff1_b"], bf2=p["ff2_b"],
                  lnfg=p["lnf_g"], lnfb=p["lnf_b"], bh=bh)

    wslab = jnp.zeros((W_ROWS, W_COLS), f32)
    for name, (off, r, c) in W_LAYOUT.items():
        wslab = wslab.at[off:off + r, 0:c].set(weights[name])
    bslab = jnp.zeros((B_ROWS, W_COLS), f32)
    for name, width in _B_ENTRIES:
        bslab = bslab.at[B_INDEX[name], 0:width].set(biases[name])

    return dict(wslab=wslab.astype(bf16), bslab=bslab)


# ---------------------------------------------------------------------------
# Forward wrapper (patch building / mask / length math are XLA glue)
# ---------------------------------------------------------------------------
@jax.jit
def wav2vec2_forward(packed, waveform, valid_lengths=None):
    """waveform: (B, T_RAW) f32 -> (logits (B, T_FEAT, VOCAB), lengths (B,))."""
    assert waveform.shape == (B, T_RAW), waveform.shape
    if valid_lengths is None:
        valid_lengths = jnp.full((B,), waveform.shape[1], jnp.int32)

    # im2col for conv0, K padded to 16, frame pairs grouped along lanes so the
    # kernel's block-diagonal conv0 weight handles the conv1 unfold for free.
    idx = jnp.arange(T0)[:, None] * CONV0_S + jnp.arange(CONV0_K)[None, :]
    pat = waveform[:, idx]                                      # (B, T0, 10)
    pat = jnp.pad(pat, ((0, 0), (0, 0), (0, K0PAD - CONV0_K)))   # (B, T0, 16)
    patches = pat.reshape(B * T_FEAT, 2 * K0PAD).astype(jnp.bfloat16)

    # downsampled valid lengths (matches the conv formulas) + key-padding mask
    # pre-expanded to (B, T, T) so the kernel never re-broadcasts per head.
    out_lengths = conv_out_len(conv_out_len(valid_lengths, CONV0_K, CONV0_S),
                               CONV1_K, CONV1_S)
    key_mask = jnp.where(jnp.arange(T_FEAT)[None, :] < out_lengths[:, None],
                         0.0, -1e9).astype(jnp.float32)          # (B, T_FEAT)
    mask_btt = jnp.broadcast_to(key_mask[:, None, :], (B, T_FEAT, T_FEAT))

    vmem = pl.BlockSpec(memory_space=pltpu.MemorySpace.VMEM)
    logits_pad = pl.pallas_call(
        _wav2vec2_kernel,
        out_shape=jax.ShapeDtypeStruct((B, T_FEAT, VOCAB_PAD), jnp.float32),
        in_specs=[vmem, vmem, vmem, vmem],
        out_specs=vmem,
        scratch_shapes=[pltpu.VMEM((B * T_FEAT, D), jnp.float32)],
    )(patches, mask_btt, packed["wslab"], packed["bslab"])

    logits = logits_pad[:, :, :VOCAB]
    return logits, out_lengths


if __name__ == "__main__":
    key = jax.random.PRNGKey(0)
    pkey, wkey = jax.random.split(key)
    params = init_params(pkey)
    packed = pack_params(params)

    waveform = jax.random.normal(wkey, (B, T_RAW), jnp.float32)
    valid_lengths = jnp.array([T_RAW, T_RAW - 20], jnp.int32)

    logits, out_lengths = wav2vec2_forward(packed, waveform, valid_lengths)
    jax.block_until_ready(logits)
    jax.block_until_ready(out_lengths)

    assert logits.shape == (B, T_FEAT, VOCAB), logits.shape
    assert out_lengths.shape == (B,)
    # inference-style sanity check (argmax over vocab, like torch.argmax(logits, -1))
    _ = jax.block_until_ready(jnp.argmax(logits, axis=-1))

    print("KERNEL_OK")
</pallas_src>

<mosaic_0001>
module attributes {stable_mosaic.version = 11 : i64} {
  func.func @_wav2vec2_kernel(%arg0: memref<32x32xbf16, #tpu.memory_space<vmem>>, %arg1: memref<2x16x16xf32, #tpu.memory_space<vmem>>, %arg2: memref<512x192xbf16, #tpu.memory_space<vmem>>, %arg3: memref<16x192xf32, #tpu.memory_space<vmem>>, %arg4: memref<2x16x128xf32, #tpu.memory_space<vmem>>, %arg5: memref<32x64xf32, #tpu.memory_space<vmem>>) attributes {dimension_semantics = [], scalar_prefetch = 0 : i64, scratch_operands = 1 : i64, tpu.core_type = #tpu.core_type<tc>} {
    %c0 = arith.constant 0 : index
    %c0_0 = arith.constant 0 : index
    %0 = vector.load %arg0[%c0, %c0_0] : memref<32x32xbf16, #tpu.memory_space<vmem>>, vector<32x32xbf16>
    %c0_1 = arith.constant 0 : index
    %c0_2 = arith.constant 0 : index
    %1 = vector.load %arg2[%c0_1, %c0_2] : memref<512x192xbf16, #tpu.memory_space<vmem>>, vector<32x64xbf16>
    %cst = arith.constant dense<0.000000e+00> : vector<32x64xf32>
    %2 = tpu.matmul %0, %1, %cst {dimension_numbers = #tpu.dot_dimension_numbers<[1], [0], [0], [1], [0, 0, 1, 1], [], []>} : vector<32x32xbf16>, vector<32x64xbf16>, vector<32x64xf32> -> vector<32x64xf32>
    %c0_3 = arith.constant 0 : index
    %c0_4 = arith.constant 0 : index
    %3 = vector.load %arg3[%c0_3, %c0_4] : memref<16x192xf32, #tpu.memory_space<vmem>>, vector<1x64xf32>
    %4 = vector.broadcast %3 : vector<1x64xf32> to vector<32x64xf32>
    %5 = arith.addf %2, %4 : vector<32x64xf32>
    %6 = arith.mulf %5, %5 : vector<32x64xf32>
    %7 = arith.mulf %5, %6 : vector<32x64xf32>
    %cst_5 = arith.constant 4.471500e-02 : f32
    %8 = vector.broadcast %cst_5 : f32 to vector<32x64xf32>
    %9 = arith.mulf %8, %7 : vector<32x64xf32>
    %10 = arith.addf %5, %9 : vector<32x64xf32>
    %cst_6 = arith.constant 0.797884583 : f32
    %11 = vector.broadcast %cst_6 : f32 to vector<32x64xf32>
    %12 = arith.mulf %11, %10 : vector<32x64xf32>
    %13 = math.tanh %12 : vector<32x64xf32>
    %cst_7 = arith.constant 1.000000e+00 : f32
    %14 = vector.broadcast %cst_7 : f32 to vector<32x64xf32>
    %15 = arith.addf %14, %13 : vector<32x64xf32>
    %cst_8 = arith.constant 5.000000e-01 : f32
    %16 = vector.broadcast %cst_8 : f32 to vector<32x64xf32>
    %17 = arith.mulf %16, %15 : vector<32x64xf32>
    %18 = arith.mulf %5, %17 : vector<32x64xf32>
    %19 = arith.truncf %18 : vector<32x64xf32> to vector<32x64xbf16>
    %c32 = arith.constant 32 : index
    %c0_9 = arith.constant 0 : index
    %20 = vector.load %arg2[%c32, %c0_9] : memref<512x192xbf16, #tpu.memory_space<vmem>>, vector<64x32xbf16>
    %cst_10 = arith.constant dense<0.000000e+00> : vector<32x32xf32>
    %21 = tpu.matmul %19, %20, %cst_10 {dimension_numbers = #tpu.dot_dimension_numbers<[1], [0], [0], [1], [0, 0, 1, 1], [], []>} : vector<32x64xbf16>, vector<64x32xbf16>, vector<32x32xf32> -> vector<32x32xf32>
    %c1 = arith.constant 1 : index
    %c0_11 = arith.constant 0 : index
    %22 = vector.load %arg3[%c1, %c0_11] : memref<16x192xf32, #tpu.memory_space<vmem>>, vector<1x32xf32>
    %23 = vector.broadcast %22 : vector<1x32xf32> to vector<32x32xf32>
    %24 = arith.addf %21, %23 : vector<32x32xf32>
    %25 = arith.mulf %24, %24 : vector<32x32xf32>
    %26 = arith.mulf %24, %25 : vector<32x32xf32>
    %cst_12 = arith.constant 4.471500e-02 : f32
    %27 = vector.broadcast %cst_12 : f32 to vector<32x32xf32>
    %28 = arith.mulf %27, %26 : vector<32x32xf32>
    %29 = arith.addf %24, %28 : vector<32x32xf32>
    %cst_13 = arith.constant 0.797884583 : f32
    %30 = vector.broadcast %cst_13 : f32 to vector<32x32xf32>
    %31 = arith.mulf %30, %29 : vector<32x32xf32>
    %32 = math.tanh %31 : vector<32x32xf32>
    %cst_14 = arith.constant 1.000000e+00 : f32
    %33 = vector.broadcast %cst_14 : f32 to vector<32x32xf32>
    %34 = arith.addf %33, %32 : vector<32x32xf32>
    %cst_15 = arith.constant 5.000000e-01 : f32
    %35 = vector.broadcast %cst_15 : f32 to vector<32x32xf32>
    %36 = arith.mulf %35, %34 : vector<32x32xf32>
    %37 = arith.mulf %24, %36 : vector<32x32xf32>
    %cst_16 = arith.constant dense<0.000000e+00> : vector<32xf32>
    %38 = vector.multi_reduction <add>, %37, %cst_16 [1] : vector<32x32xf32> to vector<32xf32>
    %39 = vector.shape_cast %38 : vector<32xf32> to vector<32x1xf32>
    %cst_17 = arith.constant 3.200000e+01 : f32
    %40 = vector.broadcast %cst_17 : f32 to vector<32x1xf32>
    %41 = arith.divf %39, %40 : vector<32x1xf32>
    %42 = vector.broadcast %41 : vector<32x1xf32> to vector<32x32xf32>
    %43 = arith.subf %37, %42 : vector<32x32xf32>
    %44 = arith.mulf %43, %43 : vector<32x32xf32>
    %cst_18 = arith.constant dense<0.000000e+00> : vector<32xf32>
    %45 = vector.multi_reduction <add>, %44, %cst_18 [1] : vector<32x32xf32> to vector<32xf32>
    %46 = vector.shape_cast %45 : vector<32xf32> to vector<32x1xf32>
    %cst_19 = arith.constant 3.200000e+01 : f32
    %47 = vector.broadcast %cst_19 : f32 to vector<32x1xf32>
    %48 = arith.divf %46, %47 : vector<32x1xf32>
    %49 = vector.broadcast %41 : vector<32x1xf32> to vector<32x32xf32>
    %50 = arith.subf %37, %49 : vector<32x32xf32>
    %cst_20 = arith.constant 9.99999974E-6 : f32
    %51 = vector.broadcast %cst_20 : f32 to vector<32x1xf32>
    %52 = arith.addf %48, %51 : vector<32x1xf32>
    %53 = math.rsqrt %52 : vector<32x1xf32>
    %54 = vector.broadcast %53 : vector<32x1xf32> to vector<32x32xf32>
    %55 = arith.mulf %50, %54 : vector<32x32xf32>
    %c2 = arith.constant 2 : index
    %c0_21 = arith.constant 0 : index
    %56 = vector.load %arg3[%c2, %c0_21] : memref<16x192xf32, #tpu.memory_space<vmem>>, vector<1x32xf32>
    %57 = vector.broadcast %56 : vector<1x32xf32> to vector<32x32xf32>
    %58 = arith.mulf %55, %57 : vector<32x32xf32>
    %c3 = arith.constant 3 : index
    %c0_22 = arith.constant 0 : index
    %59 = vector.load %arg3[%c3, %c0_22] : memref<16x192xf32, #tpu.memory_space<vmem>>, vector<1x32xf32>
    %60 = vector.broadcast %59 : vector<1x32xf32> to vector<32x32xf32>
    %61 = arith.addf %58, %60 : vector<32x32xf32>
    %62 = arith.truncf %61 : vector<32x32xf32> to vector<32x32xbf16>
    %c96 = arith.constant 96 : index
    %c0_23 = arith.constant 0 : index
    %63 = vector.load %arg2[%c96, %c0_23] : memref<512x192xbf16, #tpu.memory_space<vmem>>, vector<32x64xbf16>
    %cst_24 = arith.constant dense<0.000000e+00> : vector<32x64xf32>
    %64 = tpu.matmul %62, %63, %cst_24 {dimension_numbers = #tpu.dot_dimension_numbers<[1], [0], [0], [1], [0, 0, 1, 1], [], []>} : vector<32x32xbf16>, vector<32x64xbf16>, vector<32x64xf32> -> vector<32x64xf32>
    %c4 = arith.constant 4 : index
    %c0_25 = arith.constant 0 : index
    %65 = vector.load %arg3[%c4, %c0_25] : memref<16x192xf32, #tpu.memory_space<vmem>>, vector<1x64xf32>
    %66 = vector.broadcast %65 : vector<1x64xf32> to vector<32x64xf32>
    %67 = arith.addf %64, %66 : vector<32x64xf32>
    %cst_26 = arith.constant dense<0.000000e+00> : vector<32xf32>
    %68 = vector.multi_reduction <add>, %67, %cst_26 [1] : vector<32x64xf32> to vector<32xf32>
    %69 = vector.shape_cast %68 : vector<32xf32> to vector<32x1xf32>
    %cst_27 = arith.constant 6.400000e+01 : f32
    %70 = vector.broadcast %cst_27 : f32 to vector<32x1xf32>
    %71 = arith.divf %69, %70 : vector<32x1xf32>
    %72 = vector.broadcast %71 : vector<32x1xf32> to vector<32x64xf32>
    %73 = arith.subf %67, %72 : vector<32x64xf32>
    %74 = arith.mulf %73, %73 : vector<32x64xf32>
    %cst_28 = arith.constant dense<0.000000e+00> : vector<32xf32>
    %75 = vector.multi_reduction <add>, %74, %cst_28 [1] : vector<32x64xf32> to vector<32xf32>
    %76 = vector.shape_cast %75 : vector<32xf32> to vector<32x1xf32>
    %cst_29 = arith.constant 6.400000e+01 : f32
    %77 = vector.broadcast %cst_29 : f32 to vector<32x1xf32>
    %78 = arith.divf %76, %77 : vector<32x1xf32>
    %79 = vector.broadcast %71 : vector<32x1xf32> to vector<32x64xf32>
    %80 = arith.subf %67, %79 : vector<32x64xf32>
    %cst_30 = arith.constant 9.99999974E-6 : f32
    %81 = vector.broadcast %cst_30 : f32 to vector<32x1xf32>
    %82 = arith.addf %78, %81 : vector<32x1xf32>
    %83 = math.rsqrt %82 : vector<32x1xf32>
    %84 = vector.broadcast %83 : vector<32x1xf32> to vector<32x64xf32>
    %85 = arith.mulf %80, %84 : vector<32x64xf32>
    %c5 = arith.constant 5 : index
    %c0_31 = arith.constant 0 : index
    %86 = vector.load %arg3[%c5, %c0_31] : memref<16x192xf32, #tpu.memory_space<vmem>>, vector<1x64xf32>
    %87 = vector.broadcast %86 : vector<1x64xf32> to vector<32x64xf32>
    %88 = arith.mulf %85, %87 : vector<32x64xf32>
    %c6 = arith.constant 6 : index
    %c0_32 = arith.constant 0 : index
    %89 = vector.load %arg3[%c6, %c0_32] : memref<16x192xf32, #tpu.memory_space<vmem>>, vector<1x64xf32>
    %90 = vector.broadcast %89 : vector<1x64xf32> to vector<32x64xf32>
    %91 = arith.addf %88, %90 : vector<32x64xf32>
    %92 = arith.truncf %91 : vector<32x64xf32> to vector<32x64xbf16>
    %c128 = arith.constant 128 : index
    %c0_33 = arith.constant 0 : index
    %93 = vector.load %arg2[%c128, %c0_33] : memref<512x192xbf16, #tpu.memory_space<vmem>>, vector<64x192xbf16>
    %cst_34 = arith.constant dense<0.000000e+00> : vector<32x192xf32>
    %94 = tpu.matmul %92, %93, %cst_34 {dimension_numbers = #tpu.dot_dimension_numbers<[1], [0], [0], [1], [0, 0, 1, 1], [], []>} : vector<32x64xbf16>, vector<64x192xbf16>, vector<32x192xf32> -> vector<32x192xf32>
    %c7 = arith.constant 7 : index
    %c0_35 = arith.constant 0 : index
    %95 = vector.load %arg3[%c7, %c0_35] : memref<16x192xf32, #tpu.memory_space<vmem>>, vector<1x192xf32>
    %96 = vector.broadcast %95 : vector<1x192xf32> to vector<32x192xf32>
    %97 = arith.addf %94, %96 : vector<32x192xf32>
    %98 = arith.truncf %97 : vector<32x192xf32> to vector<32x192xbf16>
    %99 = vector.extract_strided_slice %98 {offsets = [0, 0], sizes = [32, 64], strides = [1, 1]} : vector<32x192xbf16> to vector<32x64xbf16>
    %100 = vector.extract_strided_slice %98 {offsets = [0, 64], sizes = [32, 64], strides = [1, 1]} : vector<32x192xbf16> to vector<32x64xbf16>
    %101 = vector.extract_strided_slice %98 {offsets = [0, 128], sizes = [32, 64], strides = [1, 1]} : vector<32x192xbf16> to vector<32x64xbf16>
    %c0_36 = arith.constant 0 : index
    %c0_37 = arith.constant 0 : index
    %c0_38 = arith.constant 0 : index
    %102 = vector.load %arg1[%c0_36, %c0_37, %c0_38] : memref<2x16x16xf32, #tpu.memory_space<vmem>>, vector<1x16x16xf32>
    %103 = vector.shape_cast %102 : vector<1x16x16xf32> to vector<16x16xf32>
    %104 = vector.extract_strided_slice %99 {offsets = [0, 0], sizes = [16, 64], strides = [1, 1]} : vector<32x64xbf16> to vector<16x64xbf16>
    %105 = vector.extract_strided_slice %101 {offsets = [0, 0], sizes = [16, 64], strides = [1, 1]} : vector<32x64xbf16> to vector<16x64xbf16>
    %106 = vector.extract_strided_slice %100 {offsets = [0, 0], sizes = [16, 64], strides = [1, 1]} : vector<32x64xbf16> to vector<16x64xbf16>
    %107 = tpu.transpose %106, [1, 0] : vector<16x64xbf16> -> vector<64x16xbf16>
    %108 = vector.extract_strided_slice %104 {offsets = [0, 0], sizes = [16, 16], strides = [1, 1]} : vector<16x64xbf16> to vector<16x16xbf16>
    %109 = vector.extract_strided_slice %107 {offsets = [0, 0], sizes = [16, 16], strides = [1, 1]} : vector<64x16xbf16> to vector<16x16xbf16>
    %cst_39 = arith.constant dense<0.000000e+00> : vector<16x16xf32>
    %110 = tpu.matmul %108, %109, %cst_39 {dimension_numbers = #tpu.dot_dimension_numbers<[1], [0], [0], [1], [0, 0, 1, 1], [], []>} : vector<16x16xbf16>, vector<16x16xbf16>, vector<16x16xf32> -> vector<16x16xf32>
    %111 = arith.addf %110, %103 : vector<16x16xf32>
    %cst_40 = arith.constant dense<0xFF800000> : vector<16xf32>
    %112 = vector.multi_reduction <maximumf>, %111, %cst_40 [1] : vector<16x16xf32> to vector<16xf32>
    %113 = vector.shape_cast %112 : vector<16xf32> to vector<16x1xf32>
    %114 = vector.broadcast %113 : vector<16x1xf32> to vector<16x16xf32>
    %115 = arith.subf %111, %114 : vector<16x16xf32>
    %116 = math.exp %115 : vector<16x16xf32>
    %cst_41 = arith.constant dense<0.000000e+00> : vector<16xf32>
    %117 = vector.multi_reduction <add>, %116, %cst_41 [1] : vector<16x16xf32> to vector<16xf32>
    %118 = vector.shape_cast %117 : vector<16xf32> to vector<16x1xf32>
    %119 = tpu.reciprocal %118 {approx = true} : vector<16x1xf32> -> vector<16x1xf32>
    %120 = vector.broadcast %119 : vector<16x1xf32> to vector<16x16xf32>
    %121 = arith.mulf %116, %120 : vector<16x16xf32>
    %122 = arith.truncf %121 : vector<16x16xf32> to vector<16x16xbf16>
    %123 = vector.extract_strided_slice %105 {offsets = [0, 0], sizes = [16, 16], strides = [1, 1]} : vector<16x64xbf16> to vector<16x16xbf16>
    %cst_42 = arith.constant dense<0.000000e+00> : vector<16x16xf32>
    %124 = tpu.matmul %122, %123, %cst_42 {dimension_numbers = #tpu.dot_dimension_numbers<[1], [0], [0], [1], [0, 0, 1, 1], [], []>} : vector<16x16xbf16>, vector<16x16xbf16>, vector<16x16xf32> -> vector<16x16xf32>
    %c0_43 = arith.constant 0 : index
    %c0_44 = arith.constant 0 : index
    %125 = vector.load %arg5[%c0_43, %c0_44] : memref<32x64xf32, #tpu.memory_space<vmem>>, vector<16x16xf32>
    tpu.vector_store %arg5[%c0_43, %c0_44], %124 {strides = array<i32>} : memref<32x64xf32, #tpu.memory_space<vmem>>, vector<16x16xf32>,
    %126 = vector.extract_strided_slice %104 {offsets = [0, 16], sizes = [16, 16], strides = [1, 1]} : vector<16x64xbf16> to vector<16x16xbf16>
    %127 = vector.extract_strided_slice %107 {offsets = [16, 0], sizes = [16, 16], strides = [1, 1]} : vector<64x16xbf16> to vector<16x16xbf16>
    %cst_45 = arith.constant dense<0.000000e+00> : vector<16x16xf32>
    %128 = tpu.matmul %126, %127, %cst_45 {dimension_numbers = #tpu.dot_dimension_numbers<[1], [0], [0], [1], [0, 0, 1, 1], [], []>} : vector<16x16xbf16>, vector<16x16xbf16>, vector<16x16xf32> -> vector<16x16xf32>
    %129 = arith.addf %128, %103 : vector<16x16xf32>
    %cst_46 = arith.constant dense<0xFF800000> : vector<16xf32>
    %130 = vector.multi_reduction <maximumf>, %129, %cst_46 [1] : vector<16x16xf32> to vector<16xf32>
    %131 = vector.shape_cast %130 : vector<16xf32> to vector<16x1xf32>
    %132 = vector.broadcast %131 : vector<16x1xf32> to vector<16x16xf32>
    %133 = arith.subf %129, %132 : vector<16x16xf32>
    %134 = math.exp %133 : vector<16x16xf32>
    %cst_47 = arith.constant dense<0.000000e+00> : vector<16xf32>
    %135 = vector.multi_reduction <add>, %134, %cst_47 [1] : vector<16x16xf32> to vector<16xf32>
    %136 = vector.shape_cast %135 : vector<16xf32> to vector<16x1xf32>
    %137 = tpu.reciprocal %136 {approx = true} : vector<16x1xf32> -> vector<16x1xf32>
    %138 = vector.broadcast %137 : vector<16x1xf32> to vector<16x16xf32>
    %139 = arith.mulf %134, %138 : vector<16x16xf32>
    %140 = arith.truncf %139 : vector<16x16xf32> to vector<16x16xbf16>
    %141 = vector.extract_strided_slice %105 {offsets = [0, 16], sizes = [16, 16], strides = [1, 1]} : vector<16x64xbf16> to vector<16x16xbf16>
    %cst_48 = arith.constant dense<0.000000e+00> : vector<16x16xf32>
    %142 = tpu.matmul %140, %141, %cst_48 {dimension_numbers = #tpu.dot_dimension_numbers<[1], [0], [0], [1], [0, 0, 1, 1], [], []>} : vector<16x16xbf16>, vector<16x16xbf16>, vector<16x16xf32> -> vector<16x16xf32>
    %c0_49 = arith.constant 0 : index
    %c16 = arith.constant 16 : index
    %143 = vector.load %arg5[%c0_49, %c16] : memref<32x64xf32, #tpu.memory_space<vmem>>, vector<16x16xf32>
    tpu.vector_store %arg5[%c0_49, %c16], %142 {strides = array<i32>} : memref<32x64xf32, #tpu.memory_space<vmem>>, vector<16x16xf32>,
    %144 = vector.extract_strided_slice %104 {offsets = [0, 32], sizes = [16, 16], strides = [1, 1]} : vector<16x64xbf16> to vector<16x16xbf16>
    %145 = vector.extract_strided_slice %107 {offsets = [32, 0], sizes = [16, 16], strides = [1, 1]} : vector<64x16xbf16> to vector<16x16xbf16>
    %cst_50 = arith.constant dense<0.000000e+00> : vector<16x16xf32>
    %146 = tpu.matmul %144, %145, %cst_50 {dimension_numbers = #tpu.dot_dimension_numbers<[1], [0], [0], [1], [0, 0, 1, 1], [], []>} : vector<16x16xbf16>, vector<16x16xbf16>, vector<16x16xf32> -> vector<16x16xf32>
    %147 = arith.addf %146, %103 : vector<16x16xf32>
    %cst_51 = arith.constant dense<0xFF800000> : vector<16xf32>
    %148 = vector.multi_reduction <maximumf>, %147, %cst_51 [1] : vector<16x16xf32> to vector<16xf32>
    %149 = vector.shape_cast %148 : vector<16xf32> to vector<16x1xf32>
    %150 = vector.broadcast %149 : vector<16x1xf32> to vector<16x16xf32>
    %151 = arith.subf %147, %150 : vector<16x16xf32>
    %152 = math.exp %151 : vector<16x16xf32>
    %cst_52 = arith.constant dense<0.000000e+00> : vector<16xf32>
    %153 = vector.multi_reduction <add>, %152, %cst_52 [1] : vector<16x16xf32> to vector<16xf32>
    %154 = vector.shape_cast %153 : vector<16xf32> to vector<16x1xf32>
    %155 = tpu.reciprocal %154 {approx = true} : vector<16x1xf32> -> vector<16x1xf32>
    %156 = vector.broadcast %155 : vector<16x1xf32> to vector<16x16xf32>
    %157 = arith.mulf %152, %156 : vector<16x16xf32>
    %158 = arith.truncf %157 : vector<16x16xf32> to vector<16x16xbf16>
    %159 = vector.extract_strided_slice %105 {offsets = [0, 32], sizes = [16, 16], strides = [1, 1]} : vector<16x64xbf16> to vector<16x16xbf16>
    %cst_53 = arith.constant dense<0.000000e+00> : vector<16x16xf32>
    %160 = tpu.matmul %158, %159, %cst_53 {dimension_numbers = #tpu.dot_dimension_numbers<[1], [0], [0], [1], [0, 0, 1, 1], [], []>} : vector<16x16xbf16>, vector<16x16xbf16>, vector<16x16xf32> -> vector<16x16xf32>
    %c0_54 = arith.constant 0 : index
    %c32_55 = arith.constant 32 : index
    %161 = vector.load %arg5[%c0_54, %c32_55] : memref<32x64xf32, #tpu.memory_space<vmem>>, vector<16x16xf32>
    tpu.vector_store %arg5[%c0_54, %c32_55], %160 {strides = array<i32>} : memref<32x64xf32, #tpu.memory_space<vmem>>, vector<16x16xf32>,
    %162 = vector.extract_strided_slice %104 {offsets = [0, 48], sizes = [16, 16], strides = [1, 1]} : vector<16x64xbf16> to vector<16x16xbf16>
    %163 = vector.extract_strided_slice %107 {offsets = [48, 0], sizes = [16, 16], strides = [1, 1]} : vector<64x16xbf16> to vector<16x16xbf16>
    %cst_56 = arith.constant dense<0.000000e+00> : vector<16x16xf32>
    %164 = tpu.matmul %162, %163, %cst_56 {dimension_numbers = #tpu.dot_dimension_numbers<[1], [0], [0], [1], [0, 0, 1, 1], [], []>} : vector<16x16xbf16>, vector<16x16xbf16>, vector<16x16xf32> -> vector<16x16xf32>
    %165 = arith.addf %164, %103 : vector<16x16xf32>
    %cst_57 = arith.constant dense<0xFF800000> : vector<16xf32>
    %166 = vector.multi_reduction <maximumf>, %165, %cst_57 [1] : vector<16x16xf32> to vector<16xf32>
    %167 = vector.shape_cast %166 : vector<16xf32> to vector<16x1xf32>
    %168 = vector.broadcast %167 : vector<16x1xf32> to vector<16x16xf32>
    %169 = arith.subf %165, %168 : vector<16x16xf32>
    %170 = math.exp %169 : vector<16x16xf32>
    %cst_58 = arith.constant dense<0.000000e+00> : vector<16xf32>
    %171 = vector.multi_reduction <add>, %170, %cst_58 [1] : vector<16x16xf32> to vector<16xf32>
    %172 = vector.shape_cast %171 : vector<16xf32> to vector<16x1xf32>
    %173 = tpu.reciprocal %172 {approx = true} : vector<16x1xf32> -> vector<16x1xf32>
    %174 = vector.broadcast %173 : vector<16x1xf32> to vector<16x16xf32>
    %175 = arith.mulf %170, %174 : vector<16x16xf32>
    %176 = arith.truncf %175 : vector<16x16xf32> to vector<16x16xbf16>
    %177 = vector.extract_strided_slice %105 {offsets = [0, 48], sizes = [16, 16], strides = [1, 1]} : vector<16x64xbf16> to vector<16x16xbf16>
    %cst_59 = arith.constant dense<0.000000e+00> : vector<16x16xf32>
    %178 = tpu.matmul %176, %177, %cst_59 {dimension_numbers = #tpu.dot_dimension_numbers<[1], [0], [0], [1], [0, 0, 1, 1], [], []>} : vector<16x16xbf16>, vector<16x16xbf16>, vector<16x16xf32> -> vector<16x16xf32>
    %c0_60 = arith.constant 0 : index
    %c48 = arith.constant 48 : index
    %179 = vector.load %arg5[%c0_60, %c48] : memref<32x64xf32, #tpu.memory_space<vmem>>, vector<16x16xf32>
    tpu.vector_store %arg5[%c0_60, %c48], %178 {strides = array<i32>} : memref<32x64xf32, #tpu.memory_space<vmem>>, vector<16x16xf32>,
    %c1_61 = arith.constant 1 : index
    %c0_62 = arith.constant 0 : index
    %c0_63 = arith.constant 0 : index
    %180 = vector.load %arg1[%c1_61, %c0_62, %c0_63] : memref<2x16x16xf32, #tpu.memory_space<vmem>>, vector<1x16x16xf32>
    %181 = vector.shape_cast %180 : vector<1x16x16xf32> to vector<16x16xf32>
    %182 = vector.extract_strided_slice %99 {offsets = [16, 0], sizes = [16, 64], strides = [1, 1]} : vector<32x64xbf16> to vector<16x64xbf16>
    %183 = vector.extract_strided_slice %101 {offsets = [16, 0], sizes = [16, 64], strides = [1, 1]} : vector<32x64xbf16> to vector<16x64xbf16>
    %184 = vector.extract_strided_slice %100 {offsets = [16, 0], sizes = [16, 64], strides = [1, 1]} : vector<32x64xbf16> to vector<16x64xbf16>
    %185 = tpu.transpose %184, [1, 0] : vector<16x64xbf16> -> vector<64x16xbf16>
    %186 = vector.extract_strided_slice %182 {offsets = [0, 0], sizes = [16, 16], strides = [1, 1]} : vector<16x64xbf16> to vector<16x16xbf16>
    %187 = vector.extract_strided_slice %185 {offsets = [0, 0], sizes = [16, 16], strides = [1, 1]} : vector<64x16xbf16> to vector<16x16xbf16>
    %cst_64 = arith.constant dense<0.000000e+00> : vector<16x16xf32>
    %188 = tpu.matmul %186, %187, %cst_64 {dimension_numbers = #tpu.dot_dimension_numbers<[1], [0], [0], [1], [0, 0, 1, 1], [], []>} : vector<16x16xbf16>, vector<16x16xbf16>, vector<16x16xf32> -> vector<16x16xf32>
    %189 = arith.addf %188, %181 : vector<16x16xf32>
    %cst_65 = arith.constant dense<0xFF800000> : vector<16xf32>
    %190 = vector.multi_reduction <maximumf>, %189, %cst_65 [1] : vector<16x16xf32> to vector<16xf32>
    %191 = vector.shape_cast %190 : vector<16xf32> to vector<16x1xf32>
    %192 = vector.broadcast %191 : vector<16x1xf32> to vector<16x16xf32>
    %193 = arith.subf %189, %192 : vector<16x16xf32>
    %194 = math.exp %193 : vector<16x16xf32>
    %cst_66 = arith.constant dense<0.000000e+00> : vector<16xf32>
    %195 = vector.multi_reduction <add>, %194, %cst_66 [1] : vector<16x16xf32> to vector<16xf32>
    %196 = vector.shape_cast %195 : vector<16xf32> to vector<16x1xf32>
    %197 = tpu.reciprocal %196 {approx = true} : vector<16x1xf32> -> vector<16x1xf32>
    %198 = vector.broadcast %197 : vector<16x1xf32> to vector<16x16xf32>
    %199 = arith.mulf %194, %198 : vector<16x16xf32>
    %200 = arith.truncf %199 : vector<16x16xf32> to vector<16x16xbf16>
    %201 = vector.extract_strided_slice %183 {offsets = [0, 0], sizes = [16, 16], strides = [1, 1]} : vector<16x64xbf16> to vector<16x16xbf16>
    %cst_67 = arith.constant dense<0.000000e+00> : vector<16x16xf32>
    %202 = tpu.matmul %200, %201, %cst_67 {dimension_numbers = #tpu.dot_dimension_numbers<[1], [0], [0], [1], [0, 0, 1, 1], [], []>} : vector<16x16xbf16>, vector<16x16xbf16>, vector<16x16xf32> -> vector<16x16xf32>
    %c16_68 = arith.constant 16 : index
    %c0_69 = arith.constant 0 : index
    %203 = vector.load %arg5[%c16_68, %c0_69] : memref<32x64xf32, #tpu.memory_space<vmem>>, vector<16x16xf32>
    tpu.vector_store %arg5[%c16_68, %c0_69], %202 {strides = array<i32>} : memref<32x64xf32, #tpu.memory_space<vmem>>, vector<16x16xf32>,
    %204 = vector.extract_strided_slice %182 {offsets = [0, 16], sizes = [16, 16], strides = [1, 1]} : vector<16x64xbf16> to vector<16x16xbf16>
    %205 = vector.extract_strided_slice %185 {offsets = [16, 0], sizes = [16, 16], strides = [1, 1]} : vector<64x16xbf16> to vector<16x16xbf16>
    %cst_70 = arith.constant dense<0.000000e+00> : vector<16x16xf32>
    %206 = tpu.matmul %204, %205, %cst_70 {dimension_numbers = #tpu.dot_dimension_numbers<[1], [0], [0], [1], [0, 0, 1, 1], [], []>} : vector<16x16xbf16>, vector<16x16xbf16>, vector<16x16xf32> -> vector<16x16xf32>
    %207 = arith.addf %206, %181 : vector<16x16xf32>
    %cst_71 = arith.constant dense<0xFF800000> : vector<16xf32>
    %208 = vector.multi_reduction <maximumf>, %207, %cst_71 [1] : vector<16x16xf32> to vector<16xf32>
    %209 = vector.shape_cast %208 : vector<16xf32> to vector<16x1xf32>
    %210 = vector.broadcast %209 : vector<16x1xf32> to vector<16x16xf32>
    %211 = arith.subf %207, %210 : vector<16x16xf32>
    %212 = math.exp %211 : vector<16x16xf32>
    %cst_72 = arith.constant dense<0.000000e+00> : vector<16xf32>
    %213 = vector.multi_reduction <add>, %212, %cst_72 [1] : vector<16x16xf32> to vector<16xf32>
    %214 = vector.shape_cast %213 : vector<16xf32> to vector<16x1xf32>
    %215 = tpu.reciprocal %214 {approx = true} : vector<16x1xf32> -> vector<16x1xf32>
    %216 = vector.broadcast %215 : vector<16x1xf32> to vector<16x16xf32>
    %217 = arith.mulf %212, %216 : vector<16x16xf32>
    %218 = arith.truncf %217 : vector<16x16xf32> to vector<16x16xbf16>
    %219 = vector.extract_strided_slice %183 {offsets = [0, 16], sizes = [16, 16], strides = [1, 1]} : vector<16x64xbf16> to vector<16x16xbf16>
    %cst_73 = arith.constant dense<0.000000e+00> : vector<16x16xf32>
    %220 = tpu.matmul %218, %219, %cst_73 {dimension_numbers = #tpu.dot_dimension_numbers<[1], [0], [0], [1], [0, 0, 1, 1], [], []>} : vector<16x16xbf16>, vector<16x16xbf16>, vector<16x16xf32> -> vector<16x16xf32>
    %c16_74 = arith.constant 16 : index
    %c16_75 = arith.constant 16 : index
    %221 = vector.load %arg5[%c16_74, %c16_75] : memref<32x64xf32, #tpu.memory_space<vmem>>, vector<16x16xf32>
    tpu.vector_store %arg5[%c16_74, %c16_75], %220 {strides = array<i32>} : memref<32x64xf32, #tpu.memory_space<vmem>>, vector<16x16xf32>,
    %222 = vector.extract_strided_slice %182 {offsets = [0, 32], sizes = [16, 16], strides = [1, 1]} : vector<16x64xbf16> to vector<16x16xbf16>
    %223 = vector.extract_strided_slice %185 {offsets = [32, 0], sizes = [16, 16], strides = [1, 1]} : vector<64x16xbf16> to vector<16x16xbf16>
    %cst_76 = arith.constant dense<0.000000e+00> : vector<16x16xf32>
    %224 = tpu.matmul %222, %223, %cst_76 {dimension_numbers = #tpu.dot_dimension_numbers<[1], [0], [0], [1], [0, 0, 1, 1], [], []>} : vector<16x16xbf16>, vector<16x16xbf16>, vector<16x16xf32> -> vector<16x16xf32>
    %225 = arith.addf %224, %181 : vector<16x16xf32>
    %cst_77 = arith.constant dense<0xFF800000> : vector<16xf32>
    %226 = vector.multi_reduction <maximumf>, %225, %cst_77 [1] : vector<16x16xf32> to vector<16xf32>
    %227 = vector.shape_cast %226 : vector<16xf32> to vector<16x1xf32>
    %228 = vector.broadcast %227 : vector<16x1xf32> to vector<16x16xf32>
    %229 = arith.subf %225, %228 : vector<16x16xf32>
    %230 = math.exp %229 : vector<16x16xf32>
    %cst_78 = arith.constant dense<0.000000e+00> : vector<16xf32>
    %231 = vector.multi_reduction <add>, %230, %cst_78 [1] : vector<16x16xf32> to vector<16xf32>
    %232 = vector.shape_cast %231 : vector<16xf32> to vector<16x1xf32>
    %233 = tpu.reciprocal %232 {approx = true} : vector<16x1xf32> -> vector<16x1xf32>
    %234 = vector.broadcast %233 : vector<16x1xf32> to vector<16x16xf32>
    %235 = arith.mulf %230, %234 : vector<16x16xf32>
    %236 = arith.truncf %235 : vector<16x16xf32> to vector<16x16xbf16>
    %237 = vector.extract_strided_slice %183 {offsets = [0, 32], sizes = [16, 16], strides = [1, 1]} : vector<16x64xbf16> to vector<16x16xbf16>
    %cst_79 = arith.constant dense<0.000000e+00> : vector<16x16xf32>
    %238 = tpu.matmul %236, %237, %cst_79 {dimension_numbers = #tpu.dot_dimension_numbers<[1], [0], [0], [1], [0, 0, 1, 1], [], []>} : vector<16x16xbf16>, vector<16x16xbf16>, vector<16x16xf32> -> vector<16x16xf32>
    %c16_80 = arith.constant 16 : index
    %c32_81 = arith.constant 32 : index
    %239 = vector.load %arg5[%c16_80, %c32_81] : memref<32x64xf32, #tpu.memory_space<vmem>>, vector<16x16xf32>
    tpu.vector_store %arg5[%c16_80, %c32_81], %238 {strides = array<i32>} : memref<32x64xf32, #tpu.memory_space<vmem>>, vector<16x16xf32>,
    %240 = vector.extract_strided_slice %182 {offsets = [0, 48], sizes = [16, 16], strides = [1, 1]} : vector<16x64xbf16> to vector<16x16xbf16>
    %241 = vector.extract_strided_slice %185 {offsets = [48, 0], sizes = [16, 16], strides = [1, 1]} : vector<64x16xbf16> to vector<16x16xbf16>
    %cst_82 = arith.constant dense<0.000000e+00> : vector<16x16xf32>
    %242 = tpu.matmul %240, %241, %cst_82 {dimension_numbers = #tpu.dot_dimension_numbers<[1], [0], [0], [1], [0, 0, 1, 1], [], []>} : vector<16x16xbf16>, vector<16x16xbf16>, vector<16x16xf32> -> vector<16x16xf32>
    %243 = arith.addf %242, %181 : vector<16x16xf32>
    %cst_83 = arith.constant dense<0xFF800000> : vector<16xf32>
    %244 = vector.multi_reduction <maximumf>, %243, %cst_83 [1] : vector<16x16xf32> to vector<16xf32>
    %245 = vector.shape_cast %244 : vector<16xf32> to vector<16x1xf32>
    %246 = vector.broadcast %245 : vector<16x1xf32> to vector<16x16xf32>
    %247 = arith.subf %243, %246 : vector<16x16xf32>
    %248 = math.exp %247 : vector<16x16xf32>
    %cst_84 = arith.constant dense<0.000000e+00> : vector<16xf32>
    %249 = vector.multi_reduction <add>, %248, %cst_84 [1] : vector<16x16xf32> to vector<16xf32>
    %250 = vector.shape_cast %249 : vector<16xf32> to vector<16x1xf32>
    %251 = tpu.reciprocal %250 {approx = true} : vector<16x1xf32> -> vector<16x1xf32>
    %252 = vector.broadcast %251 : vector<16x1xf32> to vector<16x16xf32>
    %253 = arith.mulf %248, %252 : vector<16x16xf32>
    %254 = arith.truncf %253 : vector<16x16xf32> to vector<16x16xbf16>
    %255 = vector.extract_strided_slice %183 {offsets = [0, 48], sizes = [16, 16], strides = [1, 1]} : vector<16x64xbf16> to vector<16x16xbf16>
    %cst_85 = arith.constant dense<0.000000e+00> : vector<16x16xf32>
    %256 = tpu.matmul %254, %255, %cst_85 {dimension_numbers = #tpu.dot_dimension_numbers<[1], [0], [0], [1], [0, 0, 1, 1], [], []>} : vector<16x16xbf16>, vector<16x16xbf16>, vector<16x16xf32> -> vector<16x16xf32>
    %c16_86 = arith.constant 16 : index
    %c48_87 = arith.constant 48 : index
    %257 = vector.load %arg5[%c16_86, %c48_87] : memref<32x64xf32, #tpu.memory_space<vmem>>, vector<16x16xf32>
    tpu.vector_store %arg5[%c16_86, %c48_87], %256 {strides = array<i32>} : memref<32x64xf32, #tpu.memory_space<vmem>>, vector<16x16xf32>,
    %c0_88 = arith.constant 0 : index
    %c0_89 = arith.constant 0 : index
    %258 = vector.load %arg5[%c0_88, %c0_89] : memref<32x64xf32, #tpu.memory_space<vmem>>, vector<32x64xf32>
    %259 = arith.truncf %258 : vector<32x64xf32> to vector<32x64xbf16>
    %c192 = arith.constant 192 : index
    %c0_90 = arith.constant 0 : index
    %260 = vector.load %arg2[%c192, %c0_90] : memref<512x192xbf16, #tpu.memory_space<vmem>>, vector<64x64xbf16>
    %cst_91 = arith.constant dense<0.000000e+00> : vector<32x64xf32>
    %261 = tpu.matmul %259, %260, %cst_91 {dimension_numbers = #tpu.dot_dimension_numbers<[1], [0], [0], [1], [0, 0, 1, 1], [], []>} : vector<32x64xbf16>, vector<64x64xbf16>, vector<32x64xf32> -> vector<32x64xf32>
    %c8 = arith.constant 8 : index
    %c0_92 = arith.constant 0 : index
    %262 = vector.load %arg3[%c8, %c0_92] : memref<16x192xf32, #tpu.memory_space<vmem>>, vector<1x64xf32>
    %263 = vector.broadcast %262 : vector<1x64xf32> to vector<32x64xf32>
    %264 = arith.addf %261, %263 : vector<32x64xf32>
    %265 = arith.addf %67, %264 : vector<32x64xf32>
    %cst_93 = arith.constant dense<0.000000e+00> : vector<32xf32>
    %266 = vector.multi_reduction <add>, %265, %cst_93 [1] : vector<32x64xf32> to vector<32xf32>
    %267 = vector.shape_cast %266 : vector<32xf32> to vector<32x1xf32>
    %cst_94 = arith.constant 6.400000e+01 : f32
    %268 = vector.broadcast %cst_94 : f32 to vector<32x1xf32>
    %269 = arith.divf %267, %268 : vector<32x1xf32>
    %270 = vector.broadcast %269 : vector<32x1xf32> to vector<32x64xf32>
    %271 = arith.subf %265, %270 : vector<32x64xf32>
    %272 = arith.mulf %271, %271 : vector<32x64xf32>
    %cst_95 = arith.constant dense<0.000000e+00> : vector<32xf32>
    %273 = vector.multi_reduction <add>, %272, %cst_95 [1] : vector<32x64xf32> to vector<32xf32>
    %274 = vector.shape_cast %273 : vector<32xf32> to vector<32x1xf32>
    %cst_96 = arith.constant 6.400000e+01 : f32
    %275 = vector.broadcast %cst_96 : f32 to vector<32x1xf32>
    %276 = arith.divf %274, %275 : vector<32x1xf32>
    %277 = vector.broadcast %269 : vector<32x1xf32> to vector<32x64xf32>
    %278 = arith.subf %265, %277 : vector<32x64xf32>
    %cst_97 = arith.constant 9.99999974E-6 : f32
    %279 = vector.broadcast %cst_97 : f32 to vector<32x1xf32>
    %280 = arith.addf %276, %279 : vector<32x1xf32>
    %281 = math.rsqrt %280 : vector<32x1xf32>
    %282 = vector.broadcast %281 : vector<32x1xf32> to vector<32x64xf32>
    %283 = arith.mulf %278, %282 : vector<32x64xf32>
    %c9 = arith.constant 9 : index
    %c0_98 = arith.constant 0 : index
    %284 = vector.load %arg3[%c9, %c0_98] : memref<16x192xf32, #tpu.memory_space<vmem>>, vector<1x64xf32>
    %285 = vector.broadcast %284 : vector<1x64xf32> to vector<32x64xf32>
    %286 = arith.mulf %283, %285 : vector<32x64xf32>
    %c10 = arith.constant 10 : index
    %c0_99 = arith.constant 0 : index
    %287 = vector.load %arg3[%c10, %c0_99] : memref<16x192xf32, #tpu.memory_space<vmem>>, vector<1x64xf32>
    %288 = vector.broadcast %287 : vector<1x64xf32> to vector<32x64xf32>
    %289 = arith.addf %286, %288 : vector<32x64xf32>
    %290 = arith.truncf %289 : vector<32x64xf32> to vector<32x64xbf16>
    %c256 = arith.constant 256 : index
    %c0_100 = arith.constant 0 : index
    %291 = vector.load %arg2[%c256, %c0_100] : memref<512x192xbf16, #tpu.memory_space<vmem>>, vector<64x128xbf16>
    %cst_101 = arith.constant dense<0.000000e+00> : vector<32x128xf32>
    %292 = tpu.matmul %290, %291, %cst_101 {dimension_numbers = #tpu.dot_dimension_numbers<[1], [0], [0], [1], [0, 0, 1, 1], [], []>} : vector<32x64xbf16>, vector<64x128xbf16>, vector<32x128xf32> -> vector<32x128xf32>
    %c11 = arith.constant 11 : index
    %c0_102 = arith.constant 0 : index
    %293 = vector.load %arg3[%c11, %c0_102] : memref<16x192xf32, #tpu.memory_space<vmem>>, vector<1x128xf32>
    %294 = vector.broadcast %293 : vector<1x128xf32> to vector<32x128xf32>
    %295 = arith.addf %292, %294 : vector<32x128xf32>
    %296 = arith.mulf %295, %295 : vector<32x128xf32>
    %297 = arith.mulf %295, %296 : vector<32x128xf32>
    %cst_103 = arith.constant 4.471500e-02 : f32
    %298 = vector.broadcast %cst_103 : f32 to vector<32x128xf32>
    %299 = arith.mulf %298, %297 : vector<32x128xf32>
    %300 = arith.addf %295, %299 : vector<32x128xf32>
    %cst_104 = arith.constant 0.797884583 : f32
    %301 = vector.broadcast %cst_104 : f32 to vector<32x128xf32>
    %302 = arith.mulf %301, %300 : vector<32x128xf32>
    %303 = math.tanh %302 : vector<32x128xf32>
    %cst_105 = arith.constant 1.000000e+00 : f32
    %304 = vector.broadcast %cst_105 : f32 to vector<32x128xf32>
    %305 = arith.addf %304, %303 : vector<32x128xf32>
    %cst_106 = arith.constant 5.000000e-01 : f32
    %306 = vector.broadcast %cst_106 : f32 to vector<32x128xf32>
    %307 = arith.mulf %306, %305 : vector<32x128xf32>
    %308 = arith.mulf %295, %307 : vector<32x128xf32>
    %309 = arith.truncf %308 : vector<32x128xf32> to vector<32x128xbf16>
    %c320 = arith.constant 320 : index
    %c0_107 = arith.constant 0 : index
    %310 = vector.load %arg2[%c320, %c0_107] : memref<512x192xbf16, #tpu.memory_space<vmem>>, vector<128x64xbf16>
    %cst_108 = arith.constant dense<0.000000e+00> : vector<32x64xf32>
    %311 = tpu.matmul %309, %310, %cst_108 {dimension_numbers = #tpu.dot_dimension_numbers<[1], [0], [0], [1], [0, 0, 1, 1], [], []>} : vector<32x128xbf16>, vector<128x64xbf16>, vector<32x64xf32> -> vector<32x64xf32>
    %c12 = arith.constant 12 : index
    %c0_109 = arith.constant 0 : index
    %312 = vector.load %arg3[%c12, %c0_109] : memref<16x192xf32, #tpu.memory_space<vmem>>, vector<1x64xf32>
    %313 = vector.broadcast %312 : vector<1x64xf32> to vector<32x64xf32>
    %314 = arith.addf %311, %313 : vector<32x64xf32>
    %315 = arith.addf %265, %314 : vector<32x64xf32>
    %cst_110 = arith.constant dense<0.000000e+00> : vector<32xf32>
    %316 = vector.multi_reduction <add>, %315, %cst_110 [1] : vector<32x64xf32> to vector<32xf32>
    %317 = vector.shape_cast %316 : vector<32xf32> to vector<32x1xf32>
    %cst_111 = arith.constant 6.400000e+01 : f32
    %318 = vector.broadcast %cst_111 : f32 to vector<32x1xf32>
    %319 = arith.divf %317, %318 : vector<32x1xf32>
    %320 = vector.broadcast %319 : vector<32x1xf32> to vector<32x64xf32>
    %321 = arith.subf %315, %320 : vector<32x64xf32>
    %322 = arith.mulf %321, %321 : vector<32x64xf32>
    %cst_112 = arith.constant dense<0.000000e+00> : vector<32xf32>
    %323 = vector.multi_reduction <add>, %322, %cst_112 [1] : vector<32x64xf32> to vector<32xf32>
    %324 = vector.shape_cast %323 : vector<32xf32> to vector<32x1xf32>
    %cst_113 = arith.constant 6.400000e+01 : f32
    %325 = vector.broadcast %cst_113 : f32 to vector<32x1xf32>
    %326 = arith.divf %324, %325 : vector<32x1xf32>
    %327 = vector.broadcast %319 : vector<32x1xf32> to vector<32x64xf32>
    %328 = arith.subf %315, %327 : vector<32x64xf32>
    %cst_114 = arith.constant 9.99999974E-6 : f32
    %329 = vector.broadcast %cst_114 : f32 to vector<32x1xf32>
    %330 = arith.addf %326, %329 : vector<32x1xf32>
    %331 = math.rsqrt %330 : vector<32x1xf32>
    %332 = vector.broadcast %331 : vector<32x1xf32> to vector<32x64xf32>
    %333 = arith.mulf %328, %332 : vector<32x64xf32>
    %c13 = arith.constant 13 : index
    %c0_115 = arith.constant 0 : index
    %334 = vector.load %arg3[%c13, %c0_115] : memref<16x192xf32, #tpu.memory_space<vmem>>, vector<1x64xf32>
    %335 = vector.broadcast %334 : vector<1x64xf32> to vector<32x64xf32>
    %336 = arith.mulf %333, %335 : vector<32x64xf32>
    %c14 = arith.constant 14 : index
    %c0_116 = arith.constant 0 : index
    %337 = vector.load %arg3[%c14, %c0_116] : memref<16x192xf32, #tpu.memory_space<vmem>>, vector<1x64xf32>
    %338 = vector.broadcast %337 : vector<1x64xf32> to vector<32x64xf32>
    %339 = arith.addf %336, %338 : vector<32x64xf32>
    %340 = arith.truncf %339 : vector<32x64xf32> to vector<32x64xbf16>
    %c448 = arith.constant 448 : index
    %c0_117 = arith.constant 0 : index
    %341 = vector.load %arg2[%c448, %c0_117] : memref<512x192xbf16, #tpu.memory_space<vmem>>, vector<64x128xbf16>
    %cst_118 = arith.constant dense<0.000000e+00> : vector<32x128xf32>
    %342 = tpu.matmul %340, %341, %cst_118 {dimension_numbers = #tpu.dot_dimension_numbers<[1], [0], [0], [1], [0, 0, 1, 1], [], []>} : vector<32x64xbf16>, vector<64x128xbf16>, vector<32x128xf32> -> vector<32x128xf32>
    %c15 = arith.constant 15 : index
    %c0_119 = arith.constant 0 : index
    %343 = vector.load %arg3[%c15, %c0_119] : memref<16x192xf32, #tpu.memory_space<vmem>>, vector<1x128xf32>
    %344 = vector.broadcast %343 : vector<1x128xf32> to vector<32x128xf32>
    %345 = arith.addf %342, %344 : vector<32x128xf32>
    %346 = vector.shape_cast %345 : vector<32x128xf32> to vector<2x16x128xf32>
    %c0_120 = arith.constant 0 : index
    %c0_121 = arith.constant 0 : index
    %c0_122 = arith.constant 0 : index
    %347 = vector.load %arg4[%c0_120, %c0_121, %c0_122] : memref<2x16x128xf32, #tpu.memory_space<vmem>>, vector<2x16x128xf32>
    tpu.vector_store %arg4[%c0_120, %c0_121, %c0_122], %346 {strides = array<i32>} : memref<2x16x128xf32, #tpu.memory_space<vmem>>, vector<2x16x128xf32>,
    return
  }
}

</mosaic_0001>

<bundles_post_ra>
// kernel: wav2vec2_forward.1
= control target key start
LH: loop header
LB: loop body
LE: loop exit
PB: predicated region body
PF: predicated region fallthrough
CT: control target
= control target key end

     0   :  { %vm50_vm0 = vcmask 261120   ;;  %s3340_s0 = inlined_call_operand.vmem [shape: bf16[32,32], index: 0, kind: input, shape index: {}]   ;;  %s3341_s1 = inlined_call_operand.vmem [shape: f32[2,16,16], index: 1, kind: input, shape index: {}]   ;;  %s3342_s2 = inlined_call_operand.vmem [shape: bf16[512,192], index: 2, kind: input, shape index: {}]   ;;  %s3343_s3 = inlined_call_operand.vmem [shape: f32[16,192], index: 3, kind: input, shape index: {}]   ;;  %s3344_s4 = inlined_call_operand.hbm [shape: f32[2,16,128], index: 4, kind: output, shape index: {}]  }
   0x1   :  { %v2546_v0 = vld [vmem:[%s3342_s2] ss:$8 sps:$4 sm:$0xff]   ;;  %v2547_v1 = vld [vmem:[%s3342_s2 + $0x10] ss:$8 sps:$4 sm:$0xff]  }
   0x2   :  { %2353 = vmatprep.subr.bf16.mxu0 %v2546_v0  ;;  %v2548_v2 = vld [vmem:[%s3340_s0] sm:$0xff]   ;;  %v2549_v3 = vld [vmem:[%s3340_s0 + $0x8] sm:$0xff]  }
   0x3   :  { %2354 = vmatpush3.bf16.msra.mxu0 %v2546_v0  ;;  %2357 = vmatprep.mubr.msk.bf16.mxu0 %vm50_vm0, %v2548_v2 }
   0x4   :  { %2355 = vmatprep.subr.bf16.mxu0 %v2547_v1 }
   0x7   :  { %2356 = vmatpush3.bf16.msra.mxu0 %v2547_v1 }
   0xa   :  { %2358 = vmatmul.mubr.msk.bf16.vlgmr.msra.gmra.mrb[0].mxu0 %vm50_vm0, %v2549_v3 }
   0xb   :  { %9 = vsyncpa [#allocation4], 0  ;;  %v2550_v4 = vld [vmem:[%s3342_s2 + $0x20] ss:$8 sps:$4 sm:$0xff]   ;;  %v2551_v5 = vld [vmem:[%s3342_s2 + $0x30] ss:$8 sps:$4 sm:$0xff]  }
   0xc   :  { %2361 = vmatprep.subr.bf16.mxu1 %v2550_v4  ;;  %v2552_v6 = vld [vmem:[%s3342_s2 + $0x40] ss:$8 sps:$4 sm:$0xff]   ;;  %v2553_v7 = vld [vmem:[%s3342_s2 + $0x50] ss:$8 sps:$4 sm:$0xff]   ;;  %vm177_vm1 = vcmask 523264   ;;  %vm2734_vm2 = vmmov 0  }
   0xd   :  { %2362 = vmatpush3.bf16.msra.mxu1 %v2550_v4  ;;  %v27_v8 = vld [vmem:[%s3343_s3] ss:$0 sm:$0xff]  ;;  %v152_v55 = vld [vmem:[%s3343_s3 + $0x1] ss:$0 sm:$0xff]  ;;  %s2735_s13 = smov 64   ;;  %vm600_vm3 = vcmask 130048  }
   0xe   :  { %2363 = vmatprep.subr.bf16.mxu1 %v2551_v5  ;;  %s2736_s18 = smov 48   ;;  %s2737_s19 = smov 112   ;;  %vm847_vm4 = vcmask 261248   ;;  %vm979_vm5 = vcmask 392448   ;;  %vm1111_vm6 = vcmask 523648  }
   0xf   :  { %s2738_s20 = smov 96   ;;  %s2739_s21 = smov 32  }
  0x10   :  { %s2740_s22 = smov 16   ;;  %s2741_s23 = smov 80  }
  0x11   :  { %2364 = vmatpush3.bf16.msra.mxu1 %v2551_v5  ;;  %s2742_s27 = smov [#allocation3]  }
  0x12   :  { %2365 = vmatprep.subr.bf16.mxu1 %v2552_v6 }
  0x15   :  { %2366 = vmatpush3.bf16.msra.mxu1 %v2552_v6 }
  0x16   :  { %2367 = vmatprep.subr.bf16.mxu1 %v2553_v7 }
  0x19   :  { %2368 = vmatpush3.bf16.msra.mxu1 %v2553_v7 }
  0xdd   :  { %v2359_v9 = vpop.f32.mrb[0].mxu0 }
  0xde   :  { %v100_v10 = vadd.f32 %v2359_v9, %v27_v8  ;;  %v91_v11 = vpop.f32.mrb[1].mxu0 }
  0xdf   :  { %v92_v12 = vadd.f32 %v91_v11, %v27_v8  ;;  %v2360_v13 = vpop.f32.mrb[2].mxu0 }
  0xe0   :  { %v108_v14 = vmul.f32 %v100_v10, %v100_v10  ;;  %v103_v15 = vadd.f32 %v2360_v13, %v27_v8  ;;  %v94_v16 = vpop.f32.mrb[3].mxu0 }
  0xe1   :  { %v106_v17 = vmul.f32 %v92_v12, %v92_v12  ;;  %v95_v18 = vadd.f32 %v94_v16, %v27_v8 }
  0xe2   :  { %v112_v19 = vmul.f32 %v108_v14, %v100_v10  ;;  %v109_v20 = vmul.f32 %v103_v15, %v103_v15 }
  0xe3   :  { %v110_v21 = vmul.f32 %v106_v17, %v92_v12  ;;  %v107_v22 = vmul.f32 %v95_v18, %v95_v18 }
  0xe4   :  { %v116_v23 = vmul.f32 0.044715, %v112_v19  ;;  %v113_v24 = vmul.f32 %v109_v20, %v103_v15 }
  0xe5   :  { %v114_v25 = vmul.f32 0.044715, %v110_v21  ;;  %v111_v26 = vmul.f32 %v107_v22, %v95_v18 }
  0xe6   :  { %v120_v27 = vadd.f32 %v116_v23, %v100_v10  ;;  %v117_v28 = vmul.f32 0.044715, %v113_v24 }
  0xe7   :  { %v118_v29 = vadd.f32 %v114_v25, %v92_v12  ;;  %v115_v30 = vmul.f32 0.044715, %v111_v26 }
  0xe8   :  { %v124_v31 = vmul.f32 0.7978846, %v120_v27  ;;  %v121_v32 = vadd.f32 %v117_v28, %v103_v15 }
  0xe9   :  { %v122_v33 = vmul.f32 0.7978846, %v118_v29  ;;  %v119_v34 = vadd.f32 %v115_v30, %v95_v18 }
  0xea   :  { %2588 = vtanh.f32 %v124_v31  ;;  %v125_v35 = vmul.f32 0.7978846, %v121_v32 }
  0xeb   :  { %v123_v36 = vmul.f32 0.7978846, %v119_v34  ;;  %2590 = vtanh.f32 %v122_v33 }
  0xec   :  { %2592 = vtanh.f32 %v125_v35 }
  0xed   :  { %2594 = vtanh.f32 %v123_v36 }
  0xf4   :  { %v2589_v37 = vpop.eup %2588 }
  0xf5   :  { %v2591_v38 = vpop.eup %2590  ;;  %v132_v39 = vadd.f32 1.0, %v2589_v37 }
  0xf6   :  { %v2593_v40 = vpop.eup %2592  ;;  %v130_v41 = vadd.f32 1.0, %v2591_v38 }
  0xf7   :  { %v2595_v42 = vpop.eup %2594  ;;  %v136_v43 = vmul.f32 0.5, %v132_v39  ;;  %v133_v44 = vadd.f32 1.0, %v2593_v40 }
  0xf8   :  { %v131_v45 = vadd.f32 1.0, %v2595_v42  ;;  %v134_v46 = vmul.f32 0.5, %v130_v41 }
  0xf9   :  { %v137_v47 = vmul.f32 0.5, %v133_v44  ;;  %v140_v49 = vmul.f32 %v136_v43, %v100_v10 }
  0xfa   :  { %v135_v48 = vmul.f32 0.5, %v131_v45  ;;  %v138_v51 = vmul.f32 %v134_v46, %v92_v12 }
  0xfb   :  { %v141_v50 = vmul.f32 %v137_v47, %v103_v15 }
  0xfc   :  { %v139_v52 = vmul.f32 %v135_v48, %v95_v18 }
  0xfd   :  { %v143_v53 = vpack.c.bf16 %v141_v50, %v140_v49 }
  0xfe   :  { %v142_v54 = vpack.c.bf16 %v139_v52, %v138_v51 }
 0x100   :  { %2369 = vmatprep.mubr.msk.bf16.mxu1 %vm177_vm1, %v142_v54 }
 0x101   :  { %2370 = vmatmul.mubr.msk.bf16.vlgmr.msra.gmra.mrb[0].mxu1 %vm177_vm1, %v143_v53 }
 0x1d4   :  { %v2371_v56 = vpop.f32.mrb[0].mxu1 }
 0x1d5   :  { %v227_v57 = vadd.f32 %v2371_v56, %v152_v55  ;;  %v218_v58 = vpop.f32.mrb[1].mxu1 }
 0x1d6   :  { %v219_v59 = vadd.f32 %v218_v58, %v152_v55  ;;  %v2372_v60 = vpop.f32.mrb[2].mxu1 }
 0x1d7   :  { %v235_v61 = vmul.f32 %v227_v57, %v227_v57  ;;  %v230_v62 = vadd.f32 %v2372_v60, %v152_v55  ;;  %v221_v63 = vpop.f32.mrb[3].mxu1  ;;  %v2554_v60 = vld [vmem:[%s3342_s2 + $0x60] ss:$8 sps:$4 sm:$0xff]  }
 0x1d8   :  { %v233_v0 = vmul.f32 %v219_v59, %v219_v59  ;;  %v222_v1 = vadd.f32 %v221_v63, %v152_v55  ;;  %2373 = vmatprep.subr.bf16.mxu0 %v2554_v60 }
 0x1d9   :  { %v239_v2 = vmul.f32 %v235_v61, %v227_v57  ;;  %v236_v3 = vmul.f32 %v230_v62, %v230_v62  ;;  %2374 = vmatpush3.bf16.msra.mxu0 %v2554_v60  ;;  %v2555_v61 = vld [vmem:[%s3342_s2 + $0x70] ss:$8 sps:$4 sm:$0xff]   ;;  %v2567_v60 = vld [vmem:[%s3342_s2 + $0xb4] ss:$8 sps:$4 sm:$0xff]  }
 0x1da   :  { %v237_v4 = vmul.f32 %v233_v0, %v219_v59  ;;  %v234_v5 = vmul.f32 %v222_v1, %v222_v1  ;;  %2375 = vmatprep.subr.bf16.mxu0 %v2555_v61 }
 0x1db   :  { %v243_v6 = vmul.f32 0.044715, %v239_v2  ;;  %v240_v7 = vmul.f32 %v236_v3, %v230_v62 }
 0x1dc   :  { %v241_v8 = vmul.f32 0.044715, %v237_v4  ;;  %v238_v9 = vmul.f32 %v234_v5, %v222_v1 }
 0x1dd   :  { %v244_v10 = vmul.f32 0.044715, %v240_v7  ;;  %v247_v11 = vadd.f32 %v243_v6, %v227_v57  ;;  %2376 = vmatpush3.bf16.msra.mxu0 %v2555_v61  ;;  %v2732_v61 = vmov 0  }
 0x1de   :  { %v242_v12 = vmul.f32 0.044715, %v238_v9  ;;  %v245_v13 = vadd.f32 %v241_v8, %v219_v59 }
 0x1df   :  { %v248_v14 = vadd.f32 %v244_v10, %v230_v62  ;;  %v251_v15 = vmul.f32 0.7978846, %v247_v11 }
 0x1e0   :  { %v246_v16 = vadd.f32 %v242_v12, %v222_v1  ;;  %v249_v17 = vmul.f32 0.7978846, %v245_v13  ;;  %v322_v12 = vld [vmem:[%s3343_s3 + $0x2] ss:$0 sm:$0xff] }
 0x1e1   :  { %2596 = vtanh.f32 %v251_v15  ;;  %v252_v18 = vmul.f32 0.7978846, %v248_v14 }
 0x1e2   :  { %2598 = vtanh.f32 %v249_v17  ;;  %v250_v19 = vmul.f32 0.7978846, %v246_v16 }
 0x1e3   :  { %2600 = vtanh.f32 %v252_v18  ;;  %v327_v18 = vld [vmem:[%s3343_s3 + $0x3] ss:$0 sm:$0xff] }
 0x1e4   :  { %2602 = vtanh.f32 %v250_v19 }
 0x1eb   :  { %v2597_v20 = vpop.eup %2596 }
 0x1ec   :  { %v2599_v21 = vpop.eup %2598  ;;  %v259_v22 = vadd.f32 1.0, %v2597_v20 }
 0x1ed   :  { %v2601_v23 = vpop.eup %2600  ;;  %v257_v24 = vadd.f32 1.0, %v2599_v21 }
 0x1ee   :  { %v2603_v25 = vpop.eup %2602  ;;  %v263_v26 = vmul.f32 0.5, %v259_v22  ;;  %v260_v27 = vadd.f32 1.0, %v2601_v23 }
 0x1ef   :  { %v261_v28 = vmul.f32 0.5, %v257_v24  ;;  %v258_v29 = vadd.f32 1.0, %v2603_v25 }
 0x1f0   :  { %v267_v30 = vmul.f32 %v263_v26, %v227_v57  ;;  %v264_v31 = vmul.f32 0.5, %v260_v27 }
 0x1f1   :  { %v265_v32 = vmul.f32 %v261_v28, %v219_v59  ;;  %v262_v33 = vmul.f32 0.5, %v258_v29 }
 0x1f2   :  { %v275_v34 = vsel %vm50_vm0, %v267_v30, 0.0  ;;  %v268_v35 = vmul.f32 %v264_v31, %v230_v62 }
 0x1f3   :  { %276 = vadd.xlane.f32.xlu1 %v275_v34  ;;  %v269_v36 = vsel %vm50_vm0, %v265_v32, 0.0  ;;  %v266_v37 = vmul.f32 %v262_v33, %v222_v1 }
 0x1f4   :  { %270 = vadd.xlane.f32.xlu0 %v269_v36  ;;  %v278_v38 = vsel %vm50_vm0, %v268_v35, 0.0 }
 0x1f5   :  { %v272_v39 = vsel %vm50_vm0, %v266_v37, 0.0 }
 0x1f7   :  { %279 = vadd.xlane.f32.xlu1 %v278_v38 }
 0x1f8   :  { %273 = vadd.xlane.f32.xlu0 %v272_v39 }
 0x280   :  { %v277_v40 = vpop.xlane.xlu1 %276 }
 0x281   :  { %v284_v41 = vmul.f32 0.03125, %v277_v40  ;;  %v271_v42 = vpop.xlane.xlu0 %270 }
 0x282   :  { %v282_v43 = vmul.f32 0.03125, %v271_v42 }
 0x283   :  { %v288_v44 = vsub.f32 %v267_v30, %v284_v41  ;;  %v338_v30 = vld [vmem:[%s3343_s3 + $0x4] ss:$0 sm:$0xff] }
 0x284   :  { %v286_v45 = vsub.f32 %v265_v32, %v282_v43  ;;  %v280_v46 = vpop.xlane.xlu1 %279 }
 0x285   :  { %v285_v47 = vmul.f32 0.03125, %v280_v46  ;;  %v274_v48 = vpop.xlane.xlu0 %273  ;;  %v292_v54 = vmul.f32 %v288_v44, %v288_v44 }
 0x286   :  { %v283_v49 = vmul.f32 0.03125, %v274_v48  ;;  %v290_v50 = vmul.f32 %v286_v45, %v286_v45 }
 0x287   :  { %v289_v51 = vsub.f32 %v268_v35, %v285_v47  ;;  %v300_v56 = vsel %vm50_vm0, %v292_v54, 0.0  ;;  %v2556_v54 = vld [vmem:[%s3342_s2 + $0x80] ss:$8 sps:$4 sm:$0xff]  }
 0x288   :  { %v287_v52 = vsub.f32 %v266_v37, %v283_v49  ;;  %v294_v53 = vsel %vm50_vm0, %v290_v50, 0.0 }
 0x289   :  { %295 = vadd.xlane.f32.xlu0 %v294_v53  ;;  %v293_v58 = vmul.f32 %v289_v51, %v289_v51  ;;  %v2558_v53 = vld [vmem:[%s3342_s2 + $0x84] ss:$8 sps:$4 sm:$0xff]  }
 0x28a   :  { %v291_v55 = vmul.f32 %v287_v52, %v287_v52  ;;  %538 = vmatprep.subr.bf16.mxu0 %v2558_v53 }
 0x28b   :  { %v303_v59 = vsel %vm50_vm0, %v293_v58, 0.0  ;;  %v2562_v58 = vld [vmem:[%s3342_s2 + $0xa0] ss:$8 sps:$4 sm:$0xff]  }
 0x28c   :  { %v297_v57 = vsel %vm50_vm0, %v291_v55, 0.0  ;;  %v2561_v55 = vld [vmem:[%s3342_s2 + $0x94] ss:$8 sps:$4 sm:$0xff]  }
 0x28d   :  { %301 = vadd.xlane.f32.xlu0 %v300_v56  ;;  %298 = vadd.xlane.f32.xlu1 %v297_v57  ;;  %v2559_v56 = vld [vmem:[%s3342_s2 + $0x90] ss:$8 sps:$4 sm:$0xff]   ;;  %v2564_v57 = vld [vmem:[%s3342_s2 + $0xa4] ss:$8 sps:$4 sm:$0xff]  }
 0x291   :  { %304 = vadd.xlane.f32.xlu1 %v303_v59  ;;  %v2565_v59 = vld [vmem:[%s3342_s2 + $0xb0] ss:$8 sps:$4 sm:$0xff]  }
 0x316   :  { %v296_v62 = vpop.xlane.xlu0 %295 }
 0x317   :  { %v306_v63 = vmul.f32 0.03125, %v296_v62 }
 0x319   :  { %v310_v0 = vadd.f32 1e-05, %v306_v63 }
 0x31a   :  { %v299_v1 = vpop.xlane.xlu1 %298  ;;  %v302_v2 = vpop.xlane.xlu0 %301 }
 0x31b   :  { %2604 = vrsqrt.f32 %v310_v0  ;;  %v307_v3 = vmul.f32 0.03125, %v299_v1  ;;  %v308_v4 = vmul.f32 0.03125, %v302_v2 }
 0x31d   :  { %v311_v5 = vadd.f32 1e-05, %v307_v3  ;;  %v312_v6 = vadd.f32 1e-05, %v308_v4 }
 0x31e   :  { %v305_v7 = vpop.xlane.xlu1 %304 }
 0x31f   :  { %2606 = vrsqrt.f32 %v311_v5  ;;  %v309_v8 = vmul.f32 0.03125, %v305_v7 }
 0x320   :  { %2608 = vrsqrt.f32 %v312_v6 }
 0x321   :  { %v313_v9 = vadd.f32 1e-05, %v309_v8 }
 0x323   :  { %2610 = vrsqrt.f32 %v313_v9 }
 0x325   :  { %v2605_v10 = vpop.eup %2604 }
 0x326   :  { %v318_v11 = vmul.f32 %v2605_v10, %v286_v45 }
 0x328   :  { %v323_v16 = vmul.f32 %v322_v12, %v318_v11 }
 0x329   :  { %v2607_v13 = vpop.eup %2606 }
 0x32a   :  { %v2609_v14 = vpop.eup %2608  ;;  %v319_v15 = vmul.f32 %v2607_v13, %v287_v52  ;;  %v328_v23 = vadd.f32 %v327_v18, %v323_v16  ;;  %v459_v13 = vld [vmem:[%s3343_s3 + $0x5] ss:$0 sm:$0xff] }
 0x32b   :  { %v320_v17 = vmul.f32 %v2609_v14, %v288_v44 }
 0x32c   :  { %v324_v19 = vmul.f32 %v322_v12, %v319_v15 }
 0x32d   :  { %v2611_v20 = vpop.eup %2610  ;;  %v325_v21 = vmul.f32 %v322_v12, %v320_v17 }
 0x32e   :  { %v321_v22 = vmul.f32 %v2611_v20, %v289_v51  ;;  %v329_v24 = vadd.f32 %v327_v18, %v324_v19  ;;  %v464_v20 = vld [vmem:[%s3343_s3 + $0x6] ss:$0 sm:$0xff] }
 0x32f   :  { %v330_v27 = vadd.f32 %v327_v18, %v325_v21 }
 0x330   :  { %v326_v25 = vmul.f32 %v322_v12, %v321_v22  ;;  %v332_v26 = vpack.c.bf16 %v329_v24, %v328_v23 }
 0x332   :  { %2377 = vmatprep.mubr.msk.bf16.mxu0 %vm50_vm0, %v332_v26  ;;  %v331_v28 = vadd.f32 %v327_v18, %v326_v25  ;;  %v482_v25 = vlaneseq }
 0x334   :  { %v333_v29 = vpack.c.bf16 %v331_v28, %v330_v27  ;;  %v483_v26 = vshrl.u32 %v482_v25, 7  ;;  %v2224_v27 = vld [vmem:[%s3343_s3 + $0x7] ss:$8 sm:$0x3] }
 0x336   :  { %2378 = vmatmul.mubr.msk.bf16.vlgmr.msra.gmra.mrb[4].mxu0 %vm50_vm0, %v333_v29  ;;  %v488_v28 = vsub.s32 1, %v483_v26 }
 0x337   :  { %539 = vmatpush1.bf16.msra.mxu0 %v2556_v54  ;;  %570 = vmatprep.mubr.bf16.mxu0 %v2732_v61 }
 0x338   :  { %540 = vmatprep.subr.bf16.mxu0 %v2561_v55  ;;  %v489_v29 = vrot.slane %v2224_v27, %v488_v28 }
 0x33b   :  { %541 = vmatpush1.bf16.msra.mxu0 %v2559_v56 }
 0x33c   :  { %542 = vmatprep.subr.bf16.mxu0 %v2564_v57 }
 0x33f   :  { %543 = vmatpush1.bf16.msra.mxu0 %v2562_v58 }
 0x340   :  { %544 = vmatprep.subr.bf16.mxu0 %v2567_v60 }
 0x343   :  { %545 = vmatpush1.bf16.msra.mxu0 %v2565_v59 }
 0x409   :  { %v2379_v31 = vpop.f32.mrb[4].mxu0 }
 0x40a   :  { %v2829_v32 = vadd.f32 %v2379_v31, %v338_v30  ;;  %v391_v33 = vpop.f32.mrb[5].mxu0 }
 0x40b   :  { %v2831_v34 = vadd.f32 %v391_v33, %v338_v30  ;;  %v2380_v35 = vpop.f32.mrb[6].mxu0 }
 0x40c   :  { %v2833_v36 = vadd.f32 %v2380_v35, %v338_v30  ;;  %v394_v37 = vpop.f32.mrb[7].mxu0  ;;  %v412_v51 = vsel %vm177_vm1, %v2829_v32, 0.0 }
 0x40d   :  { %v2835_v38 = vadd.f32 %v394_v37, %v338_v30  ;;  %v406_v39 = vsel %vm177_vm1, %v2831_v34, 0.0 }
 0x40e   :  { %407 = vadd.xlane.f32.xlu0 %v406_v39  ;;  %v415_v52 = vsel %vm177_vm1, %v2833_v36, 0.0 }
 0x40f   :  { %v409_v40 = vsel %vm177_vm1, %v2835_v38, 0.0 }
 0x410   :  { %410 = vadd.xlane.f32.xlu1 %v409_v40 }
 0x49b   :  { %v408_v41 = vpop.xlane.xlu0 %407 }
 0x49c   :  { %v419_v42 = vmul.f32 0.015625, %v408_v41 }
 0x49d   :  { %v411_v43 = vpop.xlane.xlu1 %410 }
 0x49e   :  { %v423_v44 = vsub.f32 %v2831_v34, %v419_v42  ;;  %v420_v45 = vmul.f32 0.015625, %v411_v43 }
 0x4a0   :  { %v424_v46 = vsub.f32 %v2835_v38, %v420_v45  ;;  %v427_v47 = vmul.f32 %v423_v44, %v423_v44 }
 0x4a2   :  { %v431_v48 = vsel %vm177_vm1, %v427_v47, 0.0  ;;  %v428_v49 = vmul.f32 %v424_v46, %v424_v46 }
 0x4a3   :  { %432 = vadd.xlane.f32.xlu0 %v431_v48 }
 0x4a4   :  { %v434_v50 = vsel %vm177_vm1, %v428_v49, 0.0  ;;  %v484_v49 = vsub.s32 0, %v483_v26 }
 0x4a5   :  { %435 = vadd.xlane.f32.xlu1 %v434_v50  ;;  %v2733_v50 = vmov 0.0  }
 0x4a6   :  { %2381 = vmatprep.subr.bf16.mxu1 %v2733_v50  ;;  %2399 = vmatprep.subr.bf16.mxu0 %v2733_v50 }
 0x4a7   :  { %2383 = vmatprep.mubr.msk.bf16.mxu1 %vm2734_vm2, %v2733_v50 }
 0x4a9   :  { %413 = vadd.xlane.f32.xlu1 %v412_v51  ;;  %v485_v51 = vrot.slane %v2224_v27, %v484_v49 }
 0x4ad   :  { %416 = vadd.xlane.f32.xlu1 %v415_v52 }
 0x530   :  { %v433_v62 = vpop.xlane.xlu0 %432 }
 0x531   :  { %v443_v63 = vmul.f32 0.015625, %v433_v62 }
 0x532   :  { %v436_v0 = vpop.xlane.xlu1 %435 }
 0x533   :  { %v447_v1 = vadd.f32 1e-05, %v443_v63  ;;  %v444_v2 = vmul.f32 0.015625, %v436_v0 }
 0x535   :  { %2612 = vrsqrt.f32 %v447_v1  ;;  %v448_v3 = vadd.f32 1e-05, %v444_v2 }
 0x536   :  { %v414_v4 = vpop.xlane.xlu1 %413 }
 0x537   :  { %2614 = vrsqrt.f32 %v448_v3  ;;  %v421_v5 = vmul.f32 0.015625, %v414_v4 }
 0x539   :  { %v425_v6 = vsub.f32 %v2829_v32, %v421_v5 }
 0x53a   :  { %v417_v7 = vpop.xlane.xlu1 %416 }
 0x53b   :  { %v422_v8 = vmul.f32 0.015625, %v417_v7  ;;  %v429_v9 = vmul.f32 %v425_v6, %v425_v6 }
 0x53d   :  { %v426_v10 = vsub.f32 %v2833_v36, %v422_v8  ;;  %v437_v11 = vsel %vm177_vm1, %v429_v9, 0.0 }
 0x53e   :  { %438 = vadd.xlane.f32.xlu1 %v437_v11 }
 0x53f   :  { %v2613_v12 = vpop.eup %2612  ;;  %v430_v14 = vmul.f32 %v426_v10, %v426_v10 }
 0x540   :  { %v455_v15 = vmul.f32 %v2613_v12, %v423_v44  ;;  %v2916_v12 = vld [vmem:[%s3341_s1 + $0x8] sm:$0xff] }
 0x541   :  { %v2615_v16 = vpop.eup %2614  ;;  %v440_v17 = vsel %vm177_vm1, %v430_v14, 0.0 }
 0x542   :  { %v460_v18 = vmul.f32 %v459_v13, %v455_v15  ;;  %v456_v19 = vmul.f32 %v2615_v16, %v424_v46  ;;  %441 = vadd.xlane.f32.xlu1 %v440_v17 }
 0x544   :  { %v461_v21 = vmul.f32 %v459_v13, %v456_v19  ;;  %v465_v22 = vadd.f32 %v464_v20, %v460_v18 }
 0x546   :  { %v466_v23 = vadd.f32 %v464_v20, %v461_v21 }
 0x548   :  { %v469_v24 = vpack.c.bf16 %v466_v23, %v465_v22 }
 0x54a   :  { %2233 = vmatmul.mubr.msk.bf16.vlgmr.msra.gmra.mrb[8].mxu0 %vm177_vm1, %v469_v24 }
 0x54b   :  { %580 = vmatprep.mubr.bf16.mxu0 %v2732_v61 }
 0x5cb   :  { %v439_v30 = vpop.xlane.xlu1 %438 }
 0x5cc   :  { %v445_v31 = vmul.f32 0.015625, %v439_v30 }
 0x5ce   :  { %v449_v33 = vadd.f32 1e-05, %v445_v31 }
 0x5cf   :  { %v442_v35 = vpop.xlane.xlu1 %441 }
 0x5d0   :  { %2616 = vrsqrt.f32 %v449_v33  ;;  %v446_v37 = vmul.f32 0.015625, %v442_v35 }
 0x5d2   :  { %v450_v39 = vadd.f32 1e-05, %v446_v37 }
 0x5d4   :  { %2618 = vrsqrt.f32 %v450_v39 }
 0x5da   :  { %v2617_v40 = vpop.eup %2616 }
 0x5db   :  { %v457_v41 = vmul.f32 %v2617_v40, %v425_v6 }
 0x5dd   :  { %v462_v44 = vmul.f32 %v459_v13, %v457_v41 }
 0x5de   :  { %v2619_v42 = vpop.eup %2618 }
 0x5df   :  { %v458_v43 = vmul.f32 %v2619_v42, %v426_v10  ;;  %v467_v46 = vadd.f32 %v464_v20, %v462_v44  ;;  %v2911_v10 = vld [vmem:[%s3341_s1] sm:$0xff] }
 0x5e1   :  { %v463_v45 = vmul.f32 %v459_v13, %v458_v43 }
 0x5e3   :  { %v468_v47 = vadd.f32 %v464_v20, %v463_v45 }
 0x5e5   :  { %v470_v48 = vpack.c.bf16 %v468_v47, %v467_v46 }
 0x5e7   :  { %2234 = vmatmul.mubr.msk.bf16.gmra.mrb[12].mxu0 %vm177_vm1, %v470_v48 }
 0x5e8   :  { %2401 = vmatprep.mubr.msk.bf16.mxu0 %vm2734_vm2, %v2733_v50 }
 0x61d   :  { %v572_v52 = vpop.f32.mrb[8].mxu0 }
 0x61e   :  { %v574_v53 = vpop.f32.mrb[9].mxu0  ;;  %v573_v55 = vadd.f32 %v572_v52, %v485_v51 }
 0x61f   :  { %v576_v54 = vpop.f32.mrb[10].mxu0  ;;  %v575_v58 = vadd.f32 %v574_v53, %v489_v29 }
 0x620   :  { %v577_v56 = vadd.f32 %v576_v54, %v485_v51  ;;  %v578_v57 = vpop.f32.mrb[11].mxu0 }
 0x621   :  { %v579_v59 = vadd.f32 %v578_v57, %v489_v29 }
 0x622   :  { %v591_v60 = vpack.c.bf16 %v577_v56, %v573_v55 }
 0x623   :  { %v2894_v61 = vpack.c.bf16 %v579_v59, %v575_v58 }
 0x624   :  { %598 = vrot.lane.b32.xlu0 %v591_v60, %s2735_s13 }
 0x696   :  { %v599_v62 = vpop.permute.xlu0 %598 }
 0x697   :  { %v605_v63 = vsel %vm600_vm3, %v599_v62, 0 }
 0x698   :  { %2382 = vmatpush3.bf16.xpose.msra.mxu1 %v605_v63 }
 0x699   :  { %2387 = vmatprep.subr.bf16.mxu1 %v2733_v50 }
 0x69f   :  { %2384 = vmatmul.mubr.msk.bf16.vlgmr.msra.gmra.mrb[4].mxu1 %vm600_vm3, %v591_v60 }
 0x6a0   :  { %2388 = vmatpush3.bf16.msra.mxu1 %v2894_v61  ;;  %2389 = vmatprep.mubr.msk.bf16.mxu1 %vm2734_vm2, %v2733_v50 }
 0x6a1   :  { %2393 = vmatprep.subr.bf16.mxu1 %v2733_v50 }
 0x6ba   :  { %v582_v0 = vpop.f32.mrb[12].mxu0 }
 0x6bb   :  { %v584_v1 = vpop.f32.mrb[13].mxu0  ;;  %v583_v3 = vadd.f32 %v582_v0, %v485_v51 }
 0x6bc   :  { %v586_v2 = vpop.f32.mrb[14].mxu0  ;;  %v585_v6 = vadd.f32 %v584_v1, %v489_v29 }
 0x6bd   :  { %v587_v4 = vadd.f32 %v586_v2, %v485_v51  ;;  %v588_v5 = vpop.f32.mrb[15].mxu0 }
 0x6be   :  { %v589_v7 = vadd.f32 %v588_v5, %v489_v29 }
 0x6bf   :  { %v2904_v8 = vpack.c.bf16 %v587_v4, %v583_v3 }
 0x6c0   :  { %v2906_v9 = vpack.c.bf16 %v589_v7, %v585_v6 }
 0x772   :  { %v641_v11 = vpop.f32.mrb[4].mxu1 }
 0x773   :  { %v642_v13 = vadd.f32 %v641_v11, %v2911_v10  ;;  %v2385_v14 = vpop.f32.mrb[5].mxu1 }
 0x774   :  { %v644_v15 = vpop.f32.mrb[6].mxu1 }
 0x775   :  { %v645_v16 = vadd.f32 %v644_v15, %v2916_v12  ;;  %v2386_v17 = vpop.f32.mrb[7].mxu1  ;;  %v648_v18 = vsel %vm600_vm3, %v642_v13, -inf }
 0x776   :  { %649 = vmax.xlane.f32.xlu1 %v648_v18 }
 0x777   :  { %v651_v19 = vsel %vm600_vm3, %v645_v16, -inf }
 0x77a   :  { %652 = vmax.xlane.f32.xlu1 %v651_v19 }
 0x78b   :  { %719 = vrot.lane.b32.xlu1 %v591_v60, %s2736_s18 }
 0x803   :  { %v650_v20 = vpop.xlane.xlu1 %649 }
 0x804   :  { %v654_v21 = vsub.f32 %v642_v13, %v650_v20 }
 0x806   :  { %v656_v22 = vmul.f32 1.442695, %v654_v21 }
 0x807   :  { %v653_v23 = vpop.xlane.xlu1 %652 }
 0x808   :  { %2620 = vpow2.f32 %v656_v22  ;;  %v655_v24 = vsub.f32 %v645_v16, %v653_v23 }
 0x80a   :  { %v658_v25 = vmul.f32 1.442695, %v655_v24 }
 0x80b   :  { %v720_v30 = vpop.permute.xlu1 %719 }
 0x80c   :  { %2622 = vpow2.f32 %v658_v25  ;;  %v725_v43 = vsel %vm600_vm3, %v720_v30, 0  ;;  %v2243_v30 = vld [vmem:[%s3341_s1 + $0x10] sm:$0xff] }
 0x812   :  { %v2621_v26 = vpop.eup %2620 }
 0x813   :  { %v660_v27 = vsel %vm600_vm3, %v2621_v26, 0.0 }
 0x814   :  { %661 = vadd.xlane.f32.xlu0 %v660_v27 }
 0x816   :  { %v2623_v28 = vpop.eup %2622 }
 0x817   :  { %v663_v29 = vsel %vm600_vm3, %v2623_v28, 0.0 }
 0x818   :  { %664 = vadd.xlane.f32.xlu1 %v663_v29 }
 0x829   :  { %717 = vrot.lane.b32.xlu1 %v591_v60, %s2737_s19 }
 0x82a   :  { %850 = vrot.lane.b32.xlu0 %v591_v60, %s2738_s20 }
 0x82d   :  { %852 = vrot.lane.b32.xlu1 %v591_v60, %s2739_s21 }
 0x82e   :  { %1368 = vrot.lane.b32.xlu0 %v2904_v8, %s2738_s20 }
 0x831   :  { %984 = vrot.lane.b32.xlu1 %v591_v60, %s2740_s22 }
 0x832   :  { %1499 = vrot.lane.b32.xlu0 %v2904_v8, %s2741_s23 }
 0x835   :  { %982 = vrot.lane.b32.xlu1 %v591_v60, %s2741_s23 }
 0x839   :  { %1118 = vrot.lane.b32.xlu1 %v2904_v8, %s2735_s13 }
 0x83d   :  { %1238 = vrot.lane.b32.xlu1 %v2904_v8, %s2736_s18 }
 0x841   :  { %1236 = vrot.lane.b32.xlu1 %v2904_v8, %s2737_s19 }
 0x845   :  { %1370 = vrot.lane.b32.xlu1 %v2904_v8, %s2739_s21 }
 0x849   :  { %1501 = vrot.lane.b32.xlu1 %v2904_v8, %s2740_s22 }
 0x8a1   :  { %v662_v31 = vpop.xlane.xlu0 %661 }
 0x8a2   :  { %2624 = vrcp.f32 %v662_v31  ;;  %v2244_v31 = vld [vmem:[%s3341_s1 + $0x18] sm:$0xff]  ;;  %s2197_s1 = sshll.u32 %s2742_s27, 4  ;;  %s2198_s1 = int_to_ptr.vmem [resolvable:$true] %s2197_s1 }
 0x8a3   :  { %s2708_s28 = scalar_lea.vmem %s2198_s1, 512  ;;  %p2713_p1 = scmp.lt.s32.totalorder %s2198_s1, %s2198_s1 }
 0x8a4   :  { %p2709_p0 = scmp.ne.s32.totalorder %s2198_s1, %s2708_s28  ;;  %p2714_p2 = scmp.lt.s32.totalorder %s2708_s28, %s2708_s28 }
 0x8a5   :  { %v665_v33 = vpop.xlane.xlu1 %664  ;;  %v851_v48 = vpop.permute.xlu0 %850 }
 0x8a6   :  { %2626 = vrcp.f32 %v665_v33  ;;  %p2715_p3 = por %p2714_p2, %p2713_p1 }
 0x8a8   :  { %p2716_p4 = pnand %p2715_p3, %p2709_p0 }
 0x8a9   :  { %v718_v39 = vpop.permute.xlu1 %717  ;;  %v1369_v59 = vpop.permute.xlu0 %1368 }
 0x8ac   :  { %v2625_v35 = vpop.eup %2624 }
 0x8ad   :  { %v668_v40 = vmul.f32 %v2625_v35, %v2621_v26  ;;  %v853_v44 = vpop.permute.xlu1 %852  ;;  %v1500_v62 = vpop.permute.xlu0 %1499 }
 0x8ae   :  { %v858_v46 = vsel %vm600_vm3, %v853_v44, 0 }
 0x8b0   :  { %v2627_v37 = vpop.eup %2626 }
 0x8b1   :  { %v669_v41 = vmul.f32 %v2627_v37, %v2623_v28  ;;  %v985_v45 = vpop.permute.xlu1 %984 }
 0x8b2   :  { %v990_v49 = vsel %vm600_vm3, %v985_v45, 0 }
 0x8b3   :  { %v670_v42 = vpack.c.bf16 %v669_v41, %v668_v40 }
 0x8b5   :  { %2390 = vmatmul.mubr.msk.bf16.vlgmr.msra.gmra.mrb[8].mxu1 %vm600_vm3, %v670_v42  ;;  %v983_v47 = vpop.permute.xlu1 %982 }
 0x8b6   :  { %2394 = vmatpush3.bf16.xpose.msra.mxu1 %v725_v43  ;;  %2395 = vmatprep.mubr.msk.bf16.mxu1 %vm2734_vm2, %v2733_v50 }
 0x8b7   :  { %2405 = vmatprep.subr.bf16.mxu1 %v2733_v50 }
 0x8b9   :  { %v1119_v51 = vpop.permute.xlu1 %1118 }
 0x8ba   :  { %v1124_v52 = vsel %vm600_vm3, %v1119_v51, 0 }
 0x8bd   :  { %2396 = vmatmul.mubr.msk.bf16.vlgmr.msra.gmra.mrb[12].mxu1 %vm600_vm3, %v718_v39  ;;  %v1239_v53 = vpop.permute.xlu1 %1238 }
 0x8be   :  { %2406 = vmatpush3.bf16.xpose.msra.mxu1 %v858_v46  ;;  %2407 = vmatprep.mubr.msk.bf16.mxu1 %vm2734_vm2, %v2733_v50  ;;  %v1244_v55 = vsel %vm600_vm3, %v1239_v53, 0 }
 0x8bf   :  { %2417 = vmatprep.subr.bf16.mxu1 %v2733_v50 }
 0x8c1   :  { %v1237_v54 = vpop.permute.xlu1 %1236 }
 0x8c5   :  { %2408 = vmatmul.mubr.msk.bf16.vlgmr.msra.gmra.mrb[16].mxu1 %vm600_vm3, %v851_v48  ;;  %v1371_v56 = vpop.permute.xlu1 %1370 }
 0x8c6   :  { %2418 = vmatpush3.bf16.xpose.msra.mxu1 %v990_v49  ;;  %2419 = vmatprep.mubr.msk.bf16.mxu1 %vm2734_vm2, %v2733_v50  ;;  %v1376_v57 = vsel %vm600_vm3, %v1371_v56, 0 }
 0x8c7   :  { %2429 = vmatprep.subr.bf16.mxu1 %v2733_v50 }
 0x8c9   :  { %v1502_v58 = vpop.permute.xlu1 %1501 }
 0x8ca   :  { %v1507_v60 = vsel %vm600_vm3, %v1502_v58, 0 }
 0x8cd   :  { %2420 = vmatmul.mubr.msk.bf16.vlgmr.msra.gmra.mrb[20].mxu1 %vm600_vm3, %v983_v47 }
 0x8ce   :  { %2430 = vmatpush3.bf16.xpose.msra.mxu1 %v1124_v52  ;;  %2431 = vmatprep.mubr.msk.bf16.mxu1 %vm2734_vm2, %v2733_v50 }
 0x8cf   :  { %2441 = vmatprep.subr.bf16.mxu1 %v2733_v50 }
 0x8d5   :  { %2432 = vmatmul.mubr.msk.bf16.vlgmr.msra.gmra.mrb[24].mxu1 %vm600_vm3, %v2904_v8 }
 0x8d6   :  { %2442 = vmatpush3.bf16.xpose.msra.mxu1 %v1244_v55  ;;  %2443 = vmatprep.mubr.msk.bf16.mxu1 %vm2734_vm2, %v2733_v50 }
 0x8d7   :  { %2453 = vmatprep.subr.bf16.mxu1 %v2733_v50 }
 0x8dd   :  { %2444 = vmatmul.mubr.msk.bf16.vlgmr.msra.gmra.mrb[28].mxu1 %vm600_vm3, %v1237_v54 }
 0x8de   :  { %2454 = vmatpush3.bf16.xpose.msra.mxu1 %v1376_v57  ;;  %2455 = vmatprep.mubr.msk.bf16.mxu1 %vm2734_vm2, %v2733_v50 }
 0x8df   :  { %2465 = vmatprep.subr.bf16.mxu1 %v2733_v50 }
 0x8e5   :  { %2456 = vmatmul.mubr.msk.bf16.vlgmr.msra.gmra.mrb[32].mxu1 %vm600_vm3, %v1369_v59 }
 0x8e6   :  { %2466 = vmatpush3.bf16.xpose.msra.mxu1 %v1507_v60  ;;  %2467 = vmatprep.mubr.msk.bf16.mxu1 %vm2734_vm2, %v2733_v50 }
 0x8ed   :  { %2468 = vmatmul.mubr.msk.bf16.vlgmr.msra.gmra.mrb[36].mxu1 %vm600_vm3, %v1500_v62 }
 0x988   :  { %v708_v63 = vpop.f32.mrb[8].mxu1 }
 0x989   :  { %715 = vst.msk [vmem:[#allocation2] sm:$0xff] %vm600_vm3, %v708_v63  ;;  %v2391_v0 = vpop.f32.mrb[9].mxu1 }
 0x98a   :  { %v711_v1 = vpop.f32.mrb[10].mxu1 }
 0x98b   :  { %716 = vst.msk [vmem:[#allocation2 + $0x8] sm:$0xff] %vm600_vm3, %v711_v1  ;;  %v2392_v2 = vpop.f32.mrb[11].mxu1 }
 0x990   :  { %v761_v3 = vpop.f32.mrb[12].mxu1 }
 0x991   :  { %v2983_v4 = vadd.f32 %v761_v3, %v2911_v10  ;;  %v2397_v5 = vpop.f32.mrb[13].mxu1 }
 0x992   :  { %v764_v6 = vpop.f32.mrb[14].mxu1 }
 0x993   :  { %v2986_v7 = vadd.f32 %v764_v6, %v2916_v12  ;;  %v2398_v8 = vpop.f32.mrb[15].mxu1  ;;  %v768_v11 = vsel %vm600_vm3, %v2983_v4, -inf }
 0x994   :  { %769 = vmax.xlane.f32.xlu1 %v768_v11 }
 0x995   :  { %v771_v13 = vsel %vm600_vm3, %v2986_v7, -inf }
 0x996   :  { %772 = vmax.xlane.f32.xlu0 %v771_v13 }
 0x998   :  { %v894_v14 = vpop.f32.mrb[16].mxu1 }
 0x999   :  { %v2993_v15 = vadd.f32 %v894_v14, %v2911_v10  ;;  %v2409_v16 = vpop.f32.mrb[17].mxu1 }
 0x99a   :  { %v897_v17 = vpop.f32.mrb[18].mxu1 }
 0x99b   :  { %v2996_v18 = vadd.f32 %v897_v17, %v2916_v12  ;;  %v2410_v19 = vpop.f32.mrb[19].mxu1  ;;  %v901_v20 = vsel %vm600_vm3, %v2993_v15, -inf }
 0x99c   :  { %902 = vmax.xlane.f32.xlu0 %v901_v20 }
 0x99d   :  { %v904_v21 = vsel %vm600_vm3, %v2996_v18, -inf }
 0x99e   :  { %905 = vmax.xlane.f32.xlu1 %v904_v21 }
 0x9a0   :  { %v1026_v22 = vpop.f32.mrb[20].mxu1 }
 0x9a1   :  { %v3003_v23 = vadd.f32 %v1026_v22, %v2911_v10  ;;  %v2421_v24 = vpop.f32.mrb[21].mxu1 }
 0x9a2   :  { %v1029_v25 = vpop.f32.mrb[22].mxu1 }
 0x9a3   :  { %v3006_v26 = vadd.f32 %v1029_v25, %v2916_v12  ;;  %v2422_v27 = vpop.f32.mrb[23].mxu1  ;;  %v1033_v28 = vsel %vm600_vm3, %v3003_v23, -inf }
 0x9a4   :  { %1034 = vmax.xlane.f32.xlu0 %v1033_v28 }
 0x9a5   :  { %v1036_v29 = vsel %vm600_vm3, %v3006_v26, -inf }
 0x9a6   :  { %1037 = vmax.xlane.f32.xlu1 %v1036_v29 }
 0x9a8   :  { %v1160_v10 = vpop.f32.mrb[24].mxu1 }
 0x9a9   :  { %v3018_v12 = vadd.f32 %v2243_v30, %v1160_v10  ;;  %v2433_v33 = vpop.f32.mrb[25].mxu1 }
 0x9aa   :  { %v1163_v35 = vpop.f32.mrb[26].mxu1 }
 0x9ab   :  { %v3020_v37 = vadd.f32 %v2244_v31, %v1163_v35  ;;  %v2434_v39 = vpop.f32.mrb[27].mxu1  ;;  %v1167_v40 = vsel %vm600_vm3, %v3018_v12, -inf }
 0x9ac   :  { %1168 = vmax.xlane.f32.xlu0 %v1167_v40 }
 0x9ad   :  { %v1170_v41 = vsel %vm600_vm3, %v3020_v37, -inf }
 0x9ae   :  { %1171 = vmax.xlane.f32.xlu1 %v1170_v41 }
 0x9b0   :  { %v1280_v42 = vpop.f32.mrb[28].mxu1 }
 0x9b1   :  { %v3026_v43 = vadd.f32 %v2243_v30, %v1280_v42  ;;  %v2445_v44 = vpop.f32.mrb[29].mxu1 }
 0x9b2   :  { %v1283_v45 = vpop.f32.mrb[30].mxu1 }
 0x9b3   :  { %v3028_v46 = vadd.f32 %v2244_v31, %v1283_v45  ;;  %v2446_v47 = vpop.f32.mrb[31].mxu1  ;;  %v1287_v48 = vsel %vm600_vm3, %v3026_v43, -inf }
 0x9b4   :  { %1288 = vmax.xlane.f32.xlu0 %v1287_v48 }
 0x9b5   :  { %v1290_v49 = vsel %vm600_vm3, %v3028_v46, -inf }
 0x9b6   :  { %1291 = vmax.xlane.f32.xlu1 %v1290_v49 }
 0x9b8   :  { %v1412_v51 = vpop.f32.mrb[32].mxu1 }
 0x9b9   :  { %v3034_v52 = vadd.f32 %v2243_v30, %v1412_v51  ;;  %v2457_v53 = vpop.f32.mrb[33].mxu1 }
 0x9ba   :  { %v1415_v54 = vpop.f32.mrb[34].mxu1 }
 0x9bb   :  { %v3036_v55 = vadd.f32 %v2244_v31, %v1415_v54  ;;  %v2458_v56 = vpop.f32.mrb[35].mxu1  ;;  %v1419_v57 = vsel %vm600_vm3, %v3034_v52, -inf }
 0x9bc   :  { %1420 = vmax.xlane.f32.xlu0 %v1419_v57 }
 0x9bd   :  { %v1422_v58 = vsel %vm600_vm3, %v3036_v55, -inf }
 0x9be   :  { %1423 = vmax.xlane.f32.xlu1 %v1422_v58 }
 0x9c0   :  { %v1543_v59 = vpop.f32.mrb[36].mxu1 }
 0x9c1   :  { %v3042_v60 = vadd.f32 %v2243_v30, %v1543_v59  ;;  %v2469_v62 = vpop.f32.mrb[37].mxu1 }
 0x9c2   :  { %v1546_v63 = vpop.f32.mrb[38].mxu1 }
 0x9c3   :  { %v3044_v0 = vadd.f32 %v2244_v31, %v1546_v63  ;;  %v2470_v1 = vpop.f32.mrb[39].mxu1  ;;  %v1550_v2 = vsel %vm600_vm3, %v3042_v60, -inf }
 0x9c4   :  { %1551 = vmax.xlane.f32.xlu0 %v1550_v2 }
 0x9c5   :  { %v1553_v3 = vsel %vm600_vm3, %v3044_v0, -inf }
 0x9c6   :  { %1554 = vmax.xlane.f32.xlu1 %v1553_v3 }
 0x9d7   :  { %924 = vrot.lane.b32.xlu1 %v2894_v61, %s2738_s20 }
 0x9da   :  { %792 = vrot.lane.b32.xlu0 %v2894_v61, %s2737_s19 }
 0xa21   :  { %v770_v5 = vpop.xlane.xlu1 %769 }
 0xa22   :  { %v774_v6 = vsub.f32 %v2983_v4, %v770_v5 }
 0xa23   :  { %v773_v8 = vpop.xlane.xlu0 %772 }
 0xa24   :  { %v776_v11 = vmul.f32 1.442695, %v774_v6  ;;  %v775_v13 = vsub.f32 %v2986_v7, %v773_v8 }
 0xa26   :  { %2628 = vpow2.f32 %v776_v11  ;;  %v778_v14 = vmul.f32 1.442695, %v775_v13 }
 0xa28   :  { %2630 = vpow2.f32 %v778_v14 }
 0xa29   :  { %v903_v16 = vpop.xlane.xlu0 %902 }
 0xa2a   :  { %v907_v17 = vsub.f32 %v2993_v15, %v903_v16 }
 0xa2b   :  { %v906_v19 = vpop.xlane.xlu1 %905 }
 0xa2c   :  { %v909_v20 = vmul.f32 1.442695, %v907_v17  ;;  %v908_v21 = vsub.f32 %v2996_v18, %v906_v19 }
 0xa2e   :  { %2632 = vpow2.f32 %v909_v20  ;;  %v911_v22 = vmul.f32 1.442695, %v908_v21 }
 0xa30   :  { %v3058_v24 = vpop.eup %2628  ;;  %2634 = vpow2.f32 %v911_v22 }
 0xa31   :  { %v1035_v4 = vpop.xlane.xlu0 %1034  ;;  %v780_v25 = vsel %vm600_vm3, %v3058_v24, 0.0 }
 0xa32   :  { %v3062_v7 = vpop.eup %2630  ;;  %v1039_v27 = vsub.f32 %v3003_v23, %v1035_v4  ;;  %781 = vadd.xlane.f32.xlu0 %v780_v25 }
 0xa33   :  { %v1038_v28 = vpop.xlane.xlu1 %1037  ;;  %v783_v15 = vsel %vm600_vm3, %v3062_v7, 0.0 }
 0xa34   :  { %v1041_v29 = vmul.f32 1.442695, %v1039_v27  ;;  %v1040_v18 = vsub.f32 %v3006_v26, %v1038_v28  ;;  %784 = vadd.xlane.f32.xlu1 %v783_v15 }
 0xa36   :  { %2636 = vpow2.f32 %v1041_v29  ;;  %v1043_v30 = vmul.f32 1.442695, %v1040_v18 }
 0xa38   :  { %v3068_v10 = vpop.eup %2632  ;;  %2638 = vpow2.f32 %v1043_v30 }
 0xa39   :  { %v1169_v31 = vpop.xlane.xlu0 %1168  ;;  %v913_v33 = vsel %vm600_vm3, %v3068_v10, 0.0 }
 0xa3a   :  { %v3072_v35 = vpop.eup %2634  ;;  %v1173_v23 = vsub.f32 %v3018_v12, %v1169_v31  ;;  %914 = vadd.xlane.f32.xlu0 %v913_v33 }
 0xa3b   :  { %v1172_v39 = vpop.xlane.xlu1 %1171  ;;  %v916_v40 = vsel %vm600_vm3, %v3072_v35, 0.0 }
 0xa3c   :  { %v1175_v26 = vmul.f32 1.442695, %v1173_v23  ;;  %v1174_v41 = vsub.f32 %v3020_v37, %v1172_v39  ;;  %917 = vadd.xlane.f32.xlu1 %v916_v40 }
 0xa3e   :  { %2640 = vpow2.f32 %v1175_v26  ;;  %v1177_v42 = vmul.f32 1.442695, %v1174_v41 }
 0xa40   :  { %v3078_v44 = vpop.eup %2636  ;;  %2642 = vpow2.f32 %v1177_v42 }
 0xa41   :  { %v1289_v45 = vpop.xlane.xlu0 %1288  ;;  %v1045_v47 = vsel %vm600_vm3, %v3078_v44, 0.0 }
 0xa42   :  { %v3082_v48 = vpop.eup %2638  ;;  %v1293_v12 = vsub.f32 %v3026_v43, %v1289_v45  ;;  %1046 = vadd.xlane.f32.xlu0 %v1045_v47 }
 0xa43   :  { %v1292_v49 = vpop.xlane.xlu1 %1291  ;;  %v1048_v51 = vsel %vm600_vm3, %v3082_v48, 0.0 }
 0xa44   :  { %v1295_v37 = vmul.f32 1.442695, %v1293_v12  ;;  %v1294_v53 = vsub.f32 %v3028_v46, %v1292_v49  ;;  %1049 = vadd.xlane.f32.xlu1 %v1048_v51 }
 0xa46   :  { %2644 = vpow2.f32 %v1295_v37  ;;  %v1297_v54 = vmul.f32 1.442695, %v1294_v53 }
 0xa48   :  { %v3088_v56 = vpop.eup %2640  ;;  %2646 = vpow2.f32 %v1297_v54 }
 0xa49   :  { %v1179_v57 = vsel %vm600_vm3, %v3088_v56, 0.0  ;;  %v1421_v46 = vpop.xlane.xlu0 %1420 }
 0xa4a   :  { %v3092_v58 = vpop.eup %2642  ;;  %1180 = vadd.xlane.f32.xlu0 %v1179_v57  ;;  %v1425_v22 = vsub.f32 %v3034_v52, %v1421_v46 }
 0xa4b   :  { %v1424_v43 = vpop.xlane.xlu1 %1423  ;;  %v1182_v59 = vsel %vm600_vm3, %v3092_v58, 0.0 }
 0xa4c   :  { %v1426_v62 = vsub.f32 %v3036_v55, %v1424_v43  ;;  %1183 = vadd.xlane.f32.xlu1 %v1182_v59  ;;  %v1427_v4 = vmul.f32 1.442695, %v1425_v22 }
 0xa4e   :  { %v1429_v63 = vmul.f32 1.442695, %v1426_v62 }
 0xa50   :  { %v3097_v1 = vpop.eup %2644  ;;  %2648 = vpow2.f32 %v1429_v63 }
 0xa51   :  { %v1552_v2 = vpop.xlane.xlu0 %1551  ;;  %v1299_v3 = vsel %vm600_vm3, %v3097_v1, 0.0 }
 0xa52   :  { %v3101_v5 = vpop.eup %2646  ;;  %v1556_v6 = vsub.f32 %v3042_v60, %v1552_v2  ;;  %1300 = vadd.xlane.f32.xlu1 %v1299_v3 }
 0xa53   :  { %v1555_v8 = vpop.xlane.xlu1 %1554  ;;  %v1302_v14 = vsel %vm600_vm3, %v3101_v5, 0.0 }
 0xa54   :  { %v1558_v11 = vmul.f32 1.442695, %v1556_v6  ;;  %v1557_v13 = vsub.f32 %v3044_v0, %v1555_v8 }
 0xa55   :  { %v793_v55 = vpop.permute.xlu0 %792 }
 0xa56   :  { %2650 = vpow2.f32 %v1558_v11  ;;  %v1560_v16 = vmul.f32 1.442695, %v1557_v13  ;;  %2400 = vmatpush3.bf16.msra.mxu0 %v793_v55  ;;  %1303 = vadd.xlane.f32.xlu1 %v1302_v14 }
 0xa57   :  { %2411 = vmatprep.subr.bf16.mxu0 %v2733_v50  ;;  %v925_v27 = vpop.permute.xlu1 %924 }
 0xa58   :  { %2652 = vpow2.f32 %v1560_v16 }
 0xa59   :  { %2654 = vpow2.f32 %v1427_v4 }
 0xa5a   :  { %v3108_v17 = vpop.eup %2648 }
 0xa5b   :  { %v1434_v60 = vsel %vm600_vm3, %v3108_v17, 0.0 }
 0xa5c   :  { %1435 = vadd.xlane.f32.xlu1 %v1434_v60 }
 0xa60   :  { %v3112_v19 = vpop.eup %2650  ;;  %1056 = vrot.lane.b32.xlu0 %v2894_v61, %s2741_s23 }
 0xa61   :  { %v1562_v0 = vsel %vm600_vm3, %v3112_v19, 0.0 }
 0xa62   :  { %v3118_v20 = vpop.eup %2652  ;;  %1563 = vadd.xlane.f32.xlu1 %v1562_v0 }
 0xa63   :  { %v1565_v21 = vsel %vm600_vm3, %v3118_v20, 0.0  ;;  %v3125_v25 = vpop.eup %2654 }
 0xa64   :  { %v1431_v61 = vsel %vm600_vm3, %v3125_v25, 0.0 }
 0xa66   :  { %1566 = vadd.xlane.f32.xlu1 %v1565_v21 }
 0xa77   :  { %1311 = vrot.lane.b32.xlu1 %v2906_v9, %s2737_s19 }
 0xa7f   :  { %1432 = vadd.xlane.f32.xlu0 %v1431_v61 }
 0xa95   :  { %1442 = vrot.lane.b32.xlu0 %v2906_v9, %s2738_s20 }
 0xa99   :  { %1573 = vrot.lane.b32.xlu0 %v2906_v9, %s2741_s23 }
 0xabf   :  { %v782_v28 = vpop.xlane.xlu0 %781 }
 0xac0   :  { %2656 = vrcp.f32 %v782_v28 }
 0xac1   :  { %v785_v52 = vpop.xlane.xlu1 %784 }
 0xac2   :  { %2658 = vrcp.f32 %v785_v52 }
 0xac7   :  { %v915_v15 = vpop.xlane.xlu0 %914 }
 0xac8   :  { %2660 = vrcp.f32 %v915_v15 }
 0xac9   :  { %v918_v29 = vpop.xlane.xlu1 %917 }
 0xaca   :  { %v2657_v18 = vpop.eup %2656  ;;  %2662 = vrcp.f32 %v918_v29 }
 0xacb   :  { %v788_v31 = vmul.f32 %v2657_v18, %v3058_v24 }
 0xacc   :  { %v2659_v30 = vpop.eup %2658 }
 0xacd   :  { %v789_v33 = vmul.f32 %v2659_v30, %v3062_v7 }
 0xacf   :  { %v790_v23 = vpack.c.bf16 %v789_v33, %v788_v31  ;;  %v1047_v39 = vpop.xlane.xlu0 %1046 }
 0xad0   :  { %2664 = vrcp.f32 %v1047_v39 }
 0xad1   :  { %2402 = vmatmul.mubr.msk.bf16.vlgmr.msra.gmra.mrb[16].mxu0 %vm600_vm3, %v790_v23  ;;  %v1050_v40 = vpop.xlane.xlu1 %1049 }
 0xad2   :  { %v2661_v26 = vpop.eup %2660  ;;  %2412 = vmatpush3.bf16.msra.mxu0 %v925_v27  ;;  %2666 = vrcp.f32 %v1050_v40  ;;  %2413 = vmatprep.mubr.msk.bf16.mxu0 %vm2734_vm2, %v2733_v50 }
 0xad3   :  { %2423 = vmatprep.subr.bf16.mxu0 %v2733_v50  ;;  %v921_v42 = vmul.f32 %v2661_v26, %v3068_v10 }
 0xad4   :  { %v2663_v41 = vpop.eup %2662 }
 0xad5   :  { %v922_v24 = vmul.f32 %v2663_v41, %v3072_v35 }
 0xad7   :  { %v1181_v7 = vpop.xlane.xlu0 %1180  ;;  %v923_v45 = vpack.c.bf16 %v922_v24, %v921_v42  ;;  %v2568_v42 = vld [vmem:[%s3342_s2 + $0xc0] ss:$8 sps:$4 sm:$0xff]   ;;  %v2569_v24 = vld [vmem:[%s3342_s2 + $0xd0] ss:$8 sps:$4 sm:$0xff]  }
 0xad8   :  { %2668 = vrcp.f32 %v1181_v7  ;;  %2477 = vmatprep.subr.bf16.mxu1 %v2568_v42  ;;  %v2570_v7 = vld [vmem:[%s3342_s2 + $0xe0] ss:$8 sps:$4 sm:$0xff]  }
 0xad9   :  { %2414 = vmatmul.mubr.msk.bf16.vlgmr.msra.gmra.mrb[20].mxu0 %vm600_vm3, %v923_v45  ;;  %v1184_v47 = vpop.xlane.xlu1 %1183  ;;  %2478 = vmatpush3.bf16.msra.mxu1 %v2568_v42  ;;  %v2571_v45 = vld [vmem:[%s3342_s2 + $0xf0] ss:$8 sps:$4 sm:$0xff]  }
 0xada   :  { %v2665_v12 = vpop.eup %2664  ;;  %2670 = vrcp.f32 %v1184_v47  ;;  %2425 = vmatprep.mubr.msk.bf16.mxu0 %vm2734_vm2, %v2733_v50  ;;  %2479 = vmatprep.subr.bf16.mxu1 %v2569_v24 }
 0xadb   :  { %v1057_v49 = vpop.permute.xlu0 %1056  ;;  %v1053_v37 = vmul.f32 %v2665_v12, %v3078_v44 }
 0xadc   :  { %v2667_v51 = vpop.eup %2666  ;;  %2424 = vmatpush3.bf16.msra.mxu0 %v1057_v49 }
 0xadd   :  { %v1054_v10 = vmul.f32 %v2667_v51, %v3082_v48  ;;  %2435 = vmatprep.subr.bf16.mxu0 %v2733_v50  ;;  %2480 = vmatpush3.bf16.msra.mxu1 %v2569_v24 }
 0xade   :  { %2481 = vmatprep.subr.bf16.mxu1 %v2570_v7 }
 0xadf   :  { %v1301_v35 = vpop.xlane.xlu1 %1300  ;;  %v1055_v53 = vpack.c.bf16 %v1054_v10, %v1053_v37 }
 0xae1   :  { %2426 = vmatmul.mubr.msk.bf16.vlgmr.msra.gmra.mrb[24].mxu0 %vm600_vm3, %v1055_v53  ;;  %2482 = vmatpush3.bf16.msra.mxu1 %v2570_v7 }
 0xae2   :  { %v2669_v54 = vpop.eup %2668  ;;  %2436 = vmatpush3.bf16.msra.mxu0 %v2906_v9  ;;  %2437 = vmatprep.mubr.msk.bf16.mxu0 %vm2734_vm2, %v2733_v50 }
 0xae3   :  { %2447 = vmatprep.subr.bf16.mxu0 %v2733_v50  ;;  %v1187_v43 = vmul.f32 %v2669_v54, %v3088_v56  ;;  %v1304_v48 = vpop.xlane.xlu1 %1303  ;;  %2483 = vmatprep.subr.bf16.mxu1 %v2571_v45 }
 0xae4   :  { %v2671_v57 = vpop.eup %2670  ;;  %2672 = vrcp.f32 %v1304_v48 }
 0xae5   :  { %v1188_v44 = vmul.f32 %v2671_v57, %v3092_v58  ;;  %2674 = vrcp.f32 %v1301_v35  ;;  %2484 = vmatpush3.bf16.msra.mxu1 %v2571_v45  ;;  %v2572_v45 = vld [vmem:[%s3342_s2 + $0x100] ss:$8 sps:$4 sm:$0xff]  }
 0xae7   :  { %v1189_v59 = vpack.c.bf16 %v1188_v44, %v1187_v43 }
 0xae9   :  { %2438 = vmatmul.mubr.msk.bf16.vlgmr.msra.gmra.mrb[28].mxu0 %vm600_vm3, %v1189_v59  ;;  %v1436_v9 = vpop.xlane.xlu1 %1435 }
 0xaea   :  { %2449 = vmatprep.mubr.msk.bf16.mxu0 %vm2734_vm2, %v2733_v50  ;;  %2676 = vrcp.f32 %v1436_v9 }
 0xaee   :  { %v2673_v46 = vpop.eup %2672 }
 0xaef   :  { %v1564_v62 = vpop.xlane.xlu1 %1563  ;;  %v2675_v2 = vpop.eup %2674  ;;  %v1308_v3 = vmul.f32 %v2673_v46, %v3101_v5 }
 0xaf0   :  { %v1307_v56 = vmul.f32 %v2675_v2, %v3097_v1 }
 0xaf2   :  { %v1309_v58 = vpack.c.bf16 %v1308_v3, %v1307_v56 }
 0xaf3   :  { %v1567_v63 = vpop.xlane.xlu1 %1566 }
 0xaf4   :  { %v2677_v1 = vpop.eup %2676 }
 0xaf5   :  { %v1440_v13 = vmul.f32 %v2677_v1, %v3108_v17 }
 0xaf7   :  { %v1312_v6 = vpop.permute.xlu1 %1311 }
 0xaf8   :  { %2448 = vmatpush3.bf16.msra.mxu0 %v1312_v6 }
 0xaf9   :  { %2459 = vmatprep.subr.bf16.mxu0 %v2733_v50 }
 0xafb   :  { %2450 = vmatmul.mubr.msk.bf16.vlgmr.msra.gmra.mrb[32].mxu0 %vm600_vm3, %v1309_v58 }
 0xafc   :  { %2461 = vmatprep.mubr.msk.bf16.mxu0 %vm2734_vm2, %v2733_v50 }
 0xb0c   :  { %v1433_v8 = vpop.xlane.xlu0 %1432 }
 0xb0d   :  { %2678 = vrcp.f32 %v1433_v8 }
 0xb0e   :  { %2680 = vrcp.f32 %v1567_v63 }
 0xb0f   :  { %2682 = vrcp.f32 %v1564_v62 }
 0xb10   :  { %v1443_v11 = vpop.permute.xlu0 %1442 }
 0xb11   :  { %2460 = vmatpush3.bf16.msra.mxu0 %v1443_v11 }
 0xb12   :  { %2471 = vmatprep.subr.bf16.mxu0 %v2733_v50 }
 0xb14   :  { %v1574_v60 = vpop.permute.xlu0 %1573 }
 0xb17   :  { %v2679_v5 = vpop.eup %2678 }
 0xb18   :  { %v1439_v55 = vmul.f32 %v2679_v5, %v3125_v25  ;;  %v2681_v16 = vpop.eup %2680  ;;  %v1644_v5 = vld [vmem:[%s3343_s3 + $0x10] ss:$0 sm:$0xff] }
 0xb19   :  { %v2683_v0 = vpop.eup %2682  ;;  %v1571_v21 = vmul.f32 %v2681_v16, %v3118_v20 }
 0xb1a   :  { %v1441_v14 = vpack.c.bf16 %v1440_v13, %v1439_v55  ;;  %v1570_v22 = vmul.f32 %v2683_v0, %v3112_v19 }
 0xb1c   :  { %2462 = vmatmul.mubr.msk.bf16.vlgmr.msra.gmra.mrb[36].mxu0 %vm600_vm3, %v1441_v14  ;;  %v1572_v4 = vpack.c.bf16 %v1571_v21, %v1570_v22 }
 0xb1d   :  { %2472 = vmatpush3.bf16.msra.mxu0 %v1574_v60  ;;  %2473 = vmatprep.mubr.msk.bf16.mxu0 %vm2734_vm2, %v2733_v50 }
 0xb1e   :  { %2489 = vmatprep.subr.bf16.mxu0 %v2572_v45 }
 0xb24   :  { %2474 = vmatmul.mubr.msk.bf16.vlgmr.msra.gmra.mrb[40].mxu0 %vm600_vm3, %v1572_v4 }
 0xb25   :  { %2490 = vmatpush3.bf16.msra.mxu0 %v2572_v45 }
 0xba4   :  { %v832_v17 = vpop.f32.mrb[16].mxu0 }
 0xba5   :  { %841 = vrot.lane.b32.xlu0 %v832_v17, %s2740_s22  ;;  %v2403_v25 = vpop.f32.mrb[17].mxu0 }
 0xba6   :  { %v835_v61 = vpop.f32.mrb[18].mxu0 }
 0xba7   :  { %v2404_v27 = vpop.f32.mrb[19].mxu0 }
 0xba9   :  { %843 = vrot.lane.b32.xlu0 %v835_v61, %s2740_s22 }
 0xbac   :  { %v964_v28 = vpop.f32.mrb[20].mxu0 }
 0xbad   :  { %973 = vrot.lane.b32.xlu1 %v964_v28, %s2739_s21  ;;  %v2415_v52 = vpop.f32.mrb[21].mxu0 }
 0xbae   :  { %v967_v50 = vpop.f32.mrb[22].mxu0 }
 0xbaf   :  { %975 = vrot.lane.b32.xlu0 %v967_v50, %s2739_s21  ;;  %v2416_v20 = vpop.f32.mrb[23].mxu0 }
 0xbb4   :  { %v1096_v19 = vpop.f32.mrb[24].mxu0 }
 0xbb5   :  { %1105 = vrot.lane.b32.xlu1 %v1096_v19, %s2736_s18  ;;  %v2427_v15 = vpop.f32.mrb[25].mxu0 }
 0xbb6   :  { %v1099_v29 = vpop.f32.mrb[26].mxu0 }
 0xbb7   :  { %1107 = vrot.lane.b32.xlu0 %v1099_v29, %s2736_s18  ;;  %v2428_v18 = vpop.f32.mrb[27].mxu0 }
 0xbbc   :  { %v1227_v30 = vpop.f32.mrb[28].mxu0 }
 0xbbd   :  { %1234 = vst.msk [vmem:[#allocation2 + $0x10] sm:$0xff] %vm600_vm3, %v1227_v30  ;;  %v2439_v31 = vpop.f32.mrb[29].mxu0 }
 0xbbe   :  { %v1230_v33 = vpop.f32.mrb[30].mxu0 }
 0xbbf   :  { %1235 = vst.msk [vmem:[#allocation2 + $0x18] sm:$0xff] %vm600_vm3, %v1230_v33  ;;  %v2440_v23 = vpop.f32.mrb[31].mxu0 }
 0xbce   :  { %v1351_v39 = vpop.f32.mrb[32].mxu0 }
 0xbcf   :  { %1360 = vrot.lane.b32.xlu1 %v1351_v39, %s2740_s22  ;;  %v2451_v40 = vpop.f32.mrb[33].mxu0 }
 0xbd0   :  { %v1354_v26 = vpop.f32.mrb[34].mxu0 }
 0xbd1   :  { %1362 = vrot.lane.b32.xlu0 %v1354_v26, %s2740_s22  ;;  %v2452_v41 = vpop.f32.mrb[35].mxu0 }
 0xbef   :  { %v1482_v47 = vpop.f32.mrb[36].mxu0 }
 0xbf0   :  { %1491 = vrot.lane.b32.xlu1 %v1482_v47, %s2739_s21  ;;  %v2463_v12 = vpop.f32.mrb[37].mxu0  ;;  %v2573_v47 = vld [vmem:[%s3342_s2 + $0x110] ss:$8 sps:$4 sm:$0xff]  }
 0xbf1   :  { %v1485_v49 = vpop.f32.mrb[38].mxu0  ;;  %2491 = vmatprep.subr.bf16.mxu0 %v2573_v47  ;;  %v2574_v12 = vld [vmem:[%s3342_s2 + $0x120] ss:$8 sps:$4 sm:$0xff]  }
 0xbf2   :  { %1493 = vrot.lane.b32.xlu0 %v1485_v49, %s2739_s21  ;;  %v2464_v51 = vpop.f32.mrb[39].mxu0  ;;  %2492 = vmatpush3.bf16.msra.mxu0 %v2573_v47  ;;  %v2575_v49 = vld [vmem:[%s3342_s2 + $0x130] ss:$8 sps:$4 sm:$0xff]  }
 0xbf3   :  { %2493 = vmatprep.subr.bf16.mxu0 %v2574_v12 }
 0xbf6   :  { %2494 = vmatpush3.bf16.msra.mxu0 %v2574_v12 }
 0xbf7   :  { %v1613_v37 = vpop.f32.mrb[40].mxu0  ;;  %2495 = vmatprep.subr.bf16.mxu0 %v2575_v49 }
 0xbf8   :  { %1622 = vrot.lane.b32.xlu1 %v1613_v37, %s2736_s18  ;;  %v2475_v10 = vpop.f32.mrb[41].mxu0 }
 0xbf9   :  { %v1616_v35 = vpop.f32.mrb[42].mxu0 }
 0xbfa   :  { %1624 = vrot.lane.b32.xlu0 %v1616_v35, %s2736_s18  ;;  %v2476_v53 = vpop.f32.mrb[43].mxu0  ;;  %2496 = vmatpush3.bf16.msra.mxu0 %v2575_v49 }
 0xc17   :  { %v842_v54 = vpop.permute.xlu0 %841 }
 0xc18   :  { %848 = vst.msk [vmem:[#allocation2] sm:$0xff] %vm847_vm4, %v842_v54 }
 0xc1b   :  { %v844_v57 = vpop.permute.xlu0 %843 }
 0xc1c   :  { %849 = vst.msk [vmem:[#allocation2 + $0x8] sm:$0xff] %vm847_vm4, %v844_v57 }
 0xc1f   :  { %v974_v43 = vpop.permute.xlu1 %973 }
 0xc20   :  { %980 = vst.msk [vmem:[#allocation2] sm:$0xff] %vm979_vm5, %v974_v43 }
 0xc21   :  { %v976_v44 = vpop.permute.xlu0 %975 }
 0xc22   :  { %981 = vst.msk [vmem:[#allocation2 + $0x8] sm:$0xff] %vm979_vm5, %v976_v44 }
 0xc27   :  { %v1106_v48 = vpop.permute.xlu1 %1105 }
 0xc28   :  { %1112 = vst.msk [vmem:[#allocation2] sm:$0xff] %vm1111_vm6, %v1106_v48 }
 0xc29   :  { %v1108_v59 = vpop.permute.xlu0 %1107 }
 0xc2a   :  { %1113 = vst.msk [vmem:[#allocation2 + $0x8] sm:$0xff] %vm1111_vm6, %v1108_v59 }
 0xc2f   :  { %v1630_v9 = vld [vmem:[#allocation2] sm:$0xff] }
 0xc31   :  { %v1631_v62 = vld [vmem:[#allocation2 + $0x8] sm:$0xff] }
 0xc32   :  { %v1634_v46 = vpack.c.bf16 %v1631_v62, %v1630_v9 }
 0xc34   :  { %2485 = vmatprep.mubr.msk.bf16.mxu1 %vm177_vm1, %v1634_v46  ;;  %v1780_v46 = vld [vmem:[%s3343_s3 + $0x11] ss:$0 sm:$0xff] }
 0xc41   :  { %v1361_v63 = vpop.permute.xlu1 %1360 }
 0xc42   :  { %1366 = vst.msk [vmem:[#allocation2 + $0x10] sm:$0xff] %vm847_vm4, %v1361_v63 }
 0xc43   :  { %v1363_v2 = vpop.permute.xlu0 %1362 }
 0xc44   :  { %1367 = vst.msk [vmem:[#allocation2 + $0x18] sm:$0xff] %vm847_vm4, %v1363_v2 }
 0xc62   :  { %v1492_v3 = vpop.permute.xlu1 %1491 }
 0xc63   :  { %1497 = vst.msk [vmem:[#allocation2 + $0x10] sm:$0xff] %vm979_vm5, %v1492_v3 }
 0xc64   :  { %v1494_v56 = vpop.permute.xlu0 %1493 }
 0xc65   :  { %1498 = vst.msk [vmem:[#allocation2 + $0x18] sm:$0xff] %vm979_vm5, %v1494_v56 }
 0xc6a   :  { %v1623_v6 = vpop.permute.xlu1 %1622 }
 0xc6b   :  { %1628 = vst.msk [vmem:[#allocation2 + $0x10] sm:$0xff] %vm1111_vm6, %v1623_v6  ;;  %v1785_v6 = vld [vmem:[%s3343_s3 + $0x12] ss:$0 sm:$0xff] }
 0xc6c   :  { %v1625_v58 = vpop.permute.xlu0 %1624 }
 0xc6d   :  { %1629 = vst.msk [vmem:[#allocation2 + $0x18] sm:$0xff] %vm1111_vm6, %v1625_v58 }
 0xc72   :  { %v1632_v8 = vld [vmem:[#allocation2 + $0x10] sm:$0xff] }
 0xc74   :  { %v1633_v11 = vld [vmem:[#allocation2 + $0x18] sm:$0xff] }
 0xc75   :  { %v1635_v1 = vpack.c.bf16 %v1633_v11, %v1632_v8 }
 0xc77   :  { %2486 = vmatmul.mubr.msk.bf16.vlgmr.msra.gmra.mrb[40].mxu1 %vm177_vm1, %v1635_v1 }
 0xd4a   :  { %v2487_v13 = vpop.f32.mrb[40].mxu1 }
 0xd4b   :  { %v1709_v55 = vpop.f32.mrb[41].mxu1  ;;  %v1718_v21 = vadd.f32 %v2487_v13, %v1644_v5 }
 0xd4c   :  { %v1710_v14 = vadd.f32 %v1709_v55, %v1644_v5  ;;  %v2488_v16 = vpop.f32.mrb[42].mxu1 }
 0xd4d   :  { %v1721_v60 = vadd.f32 %v2488_v16, %v1644_v5  ;;  %v1712_v0 = vpop.f32.mrb[43].mxu1  ;;  %v3227_v27 = vadd.f32 %v1718_v21, %v2829_v32 }
 0xd4e   :  { %v3216_v22 = vadd.f32 %v1710_v14, %v2831_v34  ;;  %v1713_v4 = vadd.f32 %v1712_v0, %v1644_v5 }
 0xd4f   :  { %v3219_v17 = vadd.f32 %v1721_v60, %v2833_v36  ;;  %v1734_v36 = vsel %vm177_vm1, %v3227_v27, 0.0 }
 0xd50   :  { %v3222_v25 = vadd.f32 %v1713_v4, %v2835_v38  ;;  %v1728_v61 = vsel %vm177_vm1, %v3216_v22, 0.0 }
 0xd51   :  { %1729 = vadd.xlane.f32.xlu1 %v1728_v61  ;;  %v1737_v34 = vsel %vm177_vm1, %v3219_v17, 0.0  ;;  %v2576_v61 = vld [vmem:[%s3342_s2 + $0x140] ss:$8 sps:$4 sm:$0xff]  }
 0xd52   :  { %v1731_v28 = vsel %vm177_vm1, %v3222_v25, 0.0  ;;  %2501 = vmatprep.subr.bf16.mxu1 %v2576_v61 }
 0xd53   :  { %1732 = vadd.xlane.f32.xlu0 %v1731_v28  ;;  %2502 = vmatpush3.bf16.msra.mxu1 %v2576_v61  ;;  %v2577_v28 = vld [vmem:[%s3342_s2 + $0x150] ss:$8 sps:$4 sm:$0xff]  }
 0xd54   :  { %2503 = vmatprep.subr.bf16.mxu1 %v2577_v28 }
 0xd55   :  { %1738 = vadd.xlane.f32.xlu1 %v1737_v34  ;;  %v2578_v34 = vld [vmem:[%s3342_s2 + $0x160] ss:$8 sps:$4 sm:$0xff]  }
 0xd57   :  { %1735 = vadd.xlane.f32.xlu0 %v1734_v36  ;;  %2504 = vmatpush3.bf16.msra.mxu1 %v2577_v28  ;;  %v2579_v36 = vld [vmem:[%s3342_s2 + $0x170] ss:$8 sps:$4 sm:$0xff]  }
 0xd58   :  { %2505 = vmatprep.subr.bf16.mxu1 %v2578_v34 }
 0xd5b   :  { %2506 = vmatpush3.bf16.msra.mxu1 %v2578_v34 }
 0xd5c   :  { %2507 = vmatprep.subr.bf16.mxu1 %v2579_v36 }
 0xd5f   :  { %2508 = vmatpush3.bf16.msra.mxu1 %v2579_v36 }
 0xdde   :  { %v1730_v38 = vpop.xlane.xlu1 %1729 }
 0xddf   :  { %v1740_v52 = vmul.f32 0.015625, %v1730_v38  ;;  %v2580_v38 = vld [vmem:[%s3342_s2 + $0x180] ss:$8 sps:$4 sm:$0xff]  }
 0xde0   :  { %v1733_v50 = vpop.xlane.xlu0 %1732  ;;  %2509 = vmatprep.subr.bf16.mxu1 %v2580_v38 }
 0xde1   :  { %v1744_v20 = vsub.f32 %v3216_v22, %v1740_v52  ;;  %v1741_v19 = vmul.f32 0.015625, %v1733_v50  ;;  %2510 = vmatpush3.bf16.msra.mxu1 %v2580_v38  ;;  %v2581_v52 = vld [vmem:[%s3342_s2 + $0x190] ss:$8 sps:$4 sm:$0xff]   ;;  %v2582_v50 = vld [vmem:[%s3342_s2 + $0x1a0] ss:$8 sps:$4 sm:$0xff]  }
 0xde2   :  { %v1739_v32 = vpop.xlane.xlu1 %1738  ;;  %2511 = vmatprep.subr.bf16.mxu1 %v2581_v52 }
 0xde3   :  { %v1745_v15 = vsub.f32 %v3222_v25, %v1741_v19  ;;  %v1743_v29 = vmul.f32 0.015625, %v1739_v32  ;;  %v1748_v18 = vmul.f32 %v1744_v20, %v1744_v20  ;;  %v1800_v19 = vld [vmem:[%s3343_s3 + $0x13] ss:$0 sm:$0xff] }
 0xde4   :  { %v1736_v30 = vpop.xlane.xlu0 %1735 }
 0xde5   :  { %v1747_v31 = vsub.f32 %v3219_v17, %v1743_v29  ;;  %v1742_v33 = vmul.f32 0.015625, %v1736_v30  ;;  %v1752_v23 = vsel %vm177_vm1, %v1748_v18, 0.0  ;;  %v1749_v39 = vmul.f32 %v1745_v15, %v1745_v15  ;;  %2512 = vmatpush3.bf16.msra.mxu1 %v2581_v52 }
 0xde6   :  { %1753 = vadd.xlane.f32.xlu0 %v1752_v23  ;;  %2513 = vmatprep.subr.bf16.mxu1 %v2582_v50 }
 0xde7   :  { %v1746_v40 = vsub.f32 %v3227_v27, %v1742_v33  ;;  %v1755_v26 = vsel %vm177_vm1, %v1749_v39, 0.0  ;;  %v1751_v41 = vmul.f32 %v1747_v31, %v1747_v31 }
 0xde8   :  { %1756 = vadd.xlane.f32.xlu1 %v1755_v26 }
 0xde9   :  { %v1750_v42 = vmul.f32 %v1746_v40, %v1746_v40  ;;  %v1761_v7 = vsel %vm177_vm1, %v1751_v41, 0.0  ;;  %2514 = vmatpush3.bf16.msra.mxu1 %v2582_v50 }
 0xdeb   :  { %v1758_v24 = vsel %vm177_vm1, %v1750_v42, 0.0 }
 0xdec   :  { %1759 = vadd.xlane.f32.xlu0 %v1758_v24  ;;  %1762 = vadd.xlane.f32.xlu1 %v1761_v7 }
 0xe73   :  { %v1754_v51 = vpop.xlane.xlu0 %1753 }
 0xe74   :  { %v1764_v37 = vmul.f32 0.015625, %v1754_v51 }
 0xe75   :  { %v1757_v10 = vpop.xlane.xlu1 %1756 }
 0xe76   :  { %v1768_v35 = vadd.f32 1e-05, %v1764_v37  ;;  %v1765_v53 = vmul.f32 0.015625, %v1757_v10 }
 0xe78   :  { %2684 = vrsqrt.f32 %v1768_v35  ;;  %v1769_v54 = vadd.f32 1e-05, %v1765_v53 }
 0xe79   :  { %v1760_v57 = vpop.xlane.xlu0 %1759  ;;  %v1763_v43 = vpop.xlane.xlu1 %1762 }
 0xe7a   :  { %2686 = vrsqrt.f32 %v1769_v54  ;;  %v1766_v44 = vmul.f32 0.015625, %v1760_v57  ;;  %v1767_v48 = vmul.f32 0.015625, %v1763_v43 }
 0xe7c   :  { %v1770_v59 = vadd.f32 1e-05, %v1766_v44  ;;  %v1771_v9 = vadd.f32 1e-05, %v1767_v48 }
 0xe7e   :  { %2688 = vrsqrt.f32 %v1770_v59 }
 0xe7f   :  { %2690 = vrsqrt.f32 %v1771_v9 }
 0xe82   :  { %v2685_v62 = vpop.eup %2684 }
 0xe83   :  { %v1776_v63 = vmul.f32 %v2685_v62, %v1744_v20  ;;  %v2583_v20 = vld [vmem:[%s3342_s2 + $0x1b0] ss:$8 sps:$4 sm:$0xff]  }
 0xe84   :  { %v2687_v2 = vpop.eup %2686  ;;  %2515 = vmatprep.subr.bf16.mxu1 %v2583_v20 }
 0xe85   :  { %v1777_v3 = vmul.f32 %v2687_v2, %v1745_v15  ;;  %v1781_v56 = vmul.f32 %v1780_v46, %v1776_v63  ;;  %2516 = vmatpush3.bf16.msra.mxu1 %v2583_v20 }
 0xe87   :  { %v1782_v58 = vmul.f32 %v1780_v46, %v1777_v3  ;;  %v1786_v5 = vadd.f32 %v1785_v6, %v1781_v56 }
 0xe88   :  { %v2689_v8 = vpop.eup %2688 }
 0xe89   :  { %v2691_v11 = vpop.eup %2690  ;;  %v1778_v1 = vmul.f32 %v2689_v8, %v1746_v40  ;;  %v1787_v13 = vadd.f32 %v1785_v6, %v1782_v58 }
 0xe8a   :  { %v1779_v55 = vmul.f32 %v2691_v11, %v1747_v31 }
 0xe8b   :  { %v1783_v14 = vmul.f32 %v1780_v46, %v1778_v1  ;;  %v1790_v16 = vpack.c.bf16 %v1787_v13, %v1786_v5 }
 0xe8c   :  { %v1784_v60 = vmul.f32 %v1780_v46, %v1779_v55 }
 0xe8d   :  { %2497 = vmatprep.mubr.msk.bf16.mxu0 %vm177_vm1, %v1790_v16  ;;  %v1788_v0 = vadd.f32 %v1785_v6, %v1783_v14  ;;  %v1934_v16 = vld [vmem:[%s3343_s3 + $0x14] ss:$0 sm:$0xff] }
 0xe8e   :  { %v1789_v21 = vadd.f32 %v1785_v6, %v1784_v60 }
 0xe90   :  { %v1791_v4 = vpack.c.bf16 %v1789_v21, %v1788_v0 }
 0xe92   :  { %2498 = vmatmul.mubr.msk.bf16.vlgmr.msra.gmra.mrb[44].mxu0 %vm177_vm1, %v1791_v4 }
 0xf65   :  { %v2499_v32 = vpop.f32.mrb[44].mxu0 }
 0xf66   :  { %v1874_v15 = vadd.f32 %v2499_v32, %v1800_v19  ;;  %v1865_v29 = vpop.f32.mrb[45].mxu0 }
 0xf67   :  { %v1866_v18 = vadd.f32 %v1865_v29, %v1800_v19  ;;  %v2500_v30 = vpop.f32.mrb[46].mxu0 }
 0xf68   :  { %v1882_v31 = vmul.f32 %v1874_v15, %v1874_v15  ;;  %v1877_v33 = vadd.f32 %v2500_v30, %v1800_v19  ;;  %v1868_v23 = vpop.f32.mrb[47].mxu0 }
 0xf69   :  { %v1880_v39 = vmul.f32 %v1866_v18, %v1866_v18  ;;  %v1869_v40 = vadd.f32 %v1868_v23, %v1800_v19 }
 0xf6a   :  { %v1886_v26 = vmul.f32 %v1882_v31, %v1874_v15  ;;  %v1883_v41 = vmul.f32 %v1877_v33, %v1877_v33 }
 0xf6b   :  { %v1884_v42 = vmul.f32 %v1880_v39, %v1866_v18  ;;  %v1881_v24 = vmul.f32 %v1869_v40, %v1869_v40 }
 0xf6c   :  { %v1890_v7 = vmul.f32 0.044715, %v1886_v26  ;;  %v1887_v45 = vmul.f32 %v1883_v41, %v1877_v33 }
 0xf6d   :  { %v1888_v47 = vmul.f32 0.044715, %v1884_v42  ;;  %v1885_v12 = vmul.f32 %v1881_v24, %v1869_v40 }
 0xf6e   :  { %v1894_v49 = vadd.f32 %v1890_v7, %v1874_v15  ;;  %v1891_v51 = vmul.f32 0.044715, %v1887_v45 }
 0xf6f   :  { %v1892_v37 = vadd.f32 %v1888_v47, %v1866_v18  ;;  %v1889_v10 = vmul.f32 0.044715, %v1885_v12 }
 0xf70   :  { %v1898_v35 = vmul.f32 0.7978846, %v1894_v49  ;;  %v1895_v53 = vadd.f32 %v1891_v51, %v1877_v33  ;;  %v2584_v51 = vld [vmem:[%s3342_s2 + $0x1c0] ss:$8 sps:$4 sm:$0xff]  }
 0xf71   :  { %v1896_v54 = vmul.f32 0.7978846, %v1892_v37  ;;  %v1893_v57 = vadd.f32 %v1889_v10, %v1869_v40  ;;  %2521 = vmatprep.subr.bf16.mxu0 %v2584_v51  ;;  %v2585_v37 = vld [vmem:[%s3342_s2 + $0x1d0] ss:$8 sps:$4 sm:$0xff]   ;;  %v2586_v10 = vld [vmem:[%s3342_s2 + $0x1e0] ss:$8 sps:$4 sm:$0xff]  }
 0xf72   :  { %2692 = vtanh.f32 %v1898_v35  ;;  %v1899_v43 = vmul.f32 0.7978846, %v1895_v53  ;;  %2522 = vmatpush3.bf16.msra.mxu0 %v2584_v51  ;;  %v2587_v35 = vld [vmem:[%s3342_s2 + $0x1f0] ss:$8 sps:$4 sm:$0xff]  }
 0xf73   :  { %2694 = vtanh.f32 %v1896_v54  ;;  %v1897_v44 = vmul.f32 0.7978846, %v1893_v57  ;;  %2523 = vmatprep.subr.bf16.mxu0 %v2585_v37 }
 0xf74   :  { %2696 = vtanh.f32 %v1899_v43 }
 0xf75   :  { %2698 = vtanh.f32 %v1897_v44 }
 0xf76   :  { %2524 = vmatpush3.bf16.msra.mxu0 %v2585_v37 }
 0xf77   :  { %2525 = vmatprep.subr.bf16.mxu0 %v2586_v10 }
 0xf7a   :  { %2526 = vmatpush3.bf16.msra.mxu0 %v2586_v10 }
 0xf7b   :  { %2527 = vmatprep.subr.bf16.mxu0 %v2587_v35 }
 0xf7c   :  { %v2693_v48 = vpop.eup %2692 }
 0xf7d   :  { %v2695_v59 = vpop.eup %2694  ;;  %v1906_v9 = vadd.f32 1.0, %v2693_v48 }
 0xf7e   :  { %v2697_v62 = vpop.eup %2696  ;;  %v1904_v46 = vadd.f32 1.0, %v2695_v59  ;;  %2528 = vmatpush3.bf16.msra.mxu0 %v2587_v35 }
 0xf7f   :  { %v2699_v63 = vpop.eup %2698  ;;  %v1910_v2 = vmul.f32 0.5, %v1906_v9  ;;  %v1907_v3 = vadd.f32 1.0, %v2697_v62 }
 0xf80   :  { %v1905_v56 = vadd.f32 1.0, %v2699_v63  ;;  %v1908_v6 = vmul.f32 0.5, %v1904_v46 }
 0xf81   :  { %v1911_v58 = vmul.f32 0.5, %v1907_v3  ;;  %v1914_v11 = vmul.f32 %v1910_v2, %v1874_v15 }
 0xf82   :  { %v1909_v8 = vmul.f32 0.5, %v1905_v56  ;;  %v1912_v5 = vmul.f32 %v1908_v6, %v1866_v18  ;;  %v2088_v56 = vld [vmem:[%s3343_s3 + $0x15] ss:$0 sm:$0xff] }
 0xf83   :  { %v1915_v1 = vmul.f32 %v1911_v58, %v1877_v33 }
 0xf84   :  { %v1913_v13 = vmul.f32 %v1909_v8, %v1869_v40 }
 0xf85   :  { %v1917_v55 = vpack.c.bf16 %v1915_v1, %v1914_v11 }
 0xf86   :  { %v1916_v14 = vpack.c.bf16 %v1913_v13, %v1912_v5  ;;  %v2093_v5 = vld [vmem:[%s3343_s3 + $0x16] ss:$0 sm:$0xff] }
 0xf88   :  { %2517 = vmatprep.mubr.bf16.mxu1 %v1916_v14 }
 0xf89   :  { %2518 = vmatmul.mubr.bf16.vlgmr.msra.gmra.mrb[44].mxu1 %v1917_v55 }
0x105c   :  { %v2519_v60 = vpop.f32.mrb[44].mxu1 }
0x105d   :  { %v2017_v0 = vpop.f32.mrb[45].mxu1  ;;  %v2026_v21 = vadd.f32 %v2519_v60, %v1934_v16 }
0x105e   :  { %v2018_v4 = vadd.f32 %v2017_v0, %v1934_v16  ;;  %v2520_v61 = vpop.f32.mrb[46].mxu1 }
0x105f   :  { %v2020_v28 = vpop.f32.mrb[47].mxu1  ;;  %v2029_v34 = vadd.f32 %v2520_v61, %v1934_v16  ;;  %v2034_v20 = vadd.f32 %v2026_v21, %v3227_v27 }
0x1060   :  { %v2021_v36 = vadd.f32 %v2020_v28, %v1934_v16  ;;  %v2032_v38 = vadd.f32 %v2018_v4, %v3216_v22 }
0x1061   :  { %v2035_v19 = vadd.f32 %v2029_v34, %v3219_v17  ;;  %v2042_v15 = vsel %vm177_vm1, %v2034_v20, 0.0 }
0x1062   :  { %v2033_v52 = vadd.f32 %v2021_v36, %v3222_v25  ;;  %v2036_v50 = vsel %vm177_vm1, %v2032_v38, 0.0 }
0x1063   :  { %2037 = vadd.xlane.f32.xlu0 %v2036_v50  ;;  %v2045_v29 = vsel %vm177_vm1, %v2035_v19, 0.0 }
0x1064   :  { %v2039_v32 = vsel %vm177_vm1, %v2033_v52, 0.0 }
0x1065   :  { %2040 = vadd.xlane.f32.xlu1 %v2039_v32 }
0x1067   :  { %2043 = vadd.xlane.f32.xlu0 %v2042_v15 }
0x1069   :  { %2046 = vadd.xlane.f32.xlu1 %v2045_v29 }
0x10f0   :  { %v2038_v18 = vpop.xlane.xlu0 %2037 }
0x10f1   :  { %v2048_v22 = vmul.f32 0.015625, %v2038_v18 }
0x10f2   :  { %v2041_v30 = vpop.xlane.xlu1 %2040 }
0x10f3   :  { %v2052_v25 = vsub.f32 %v2032_v38, %v2048_v22  ;;  %v2049_v31 = vmul.f32 0.015625, %v2041_v30  ;;  %v2108_v38 = vld [vmem:[%s3343_s3 + $0x17] ss:$0 sm:$0xff] }
0x10f4   :  { %v2044_v33 = vpop.xlane.xlu0 %2043 }
0x10f5   :  { %v2053_v23 = vsub.f32 %v2033_v52, %v2049_v31  ;;  %v2050_v27 = vmul.f32 0.015625, %v2044_v33  ;;  %v2056_v39 = vmul.f32 %v2052_v25, %v2052_v25 }
0x10f6   :  { %v2047_v40 = vpop.xlane.xlu1 %2046 }
0x10f7   :  { %v2054_v17 = vsub.f32 %v2034_v20, %v2050_v27  ;;  %v2051_v26 = vmul.f32 0.015625, %v2047_v40  ;;  %v2060_v41 = vsel %vm177_vm1, %v2056_v39, 0.0  ;;  %v2057_v42 = vmul.f32 %v2053_v23, %v2053_v23 }
0x10f8   :  { %2061 = vadd.xlane.f32.xlu0 %v2060_v41 }
0x10f9   :  { %v2055_v24 = vsub.f32 %v2035_v19, %v2051_v26  ;;  %v2063_v7 = vsel %vm177_vm1, %v2057_v42, 0.0  ;;  %v2058_v45 = vmul.f32 %v2054_v17, %v2054_v17 }
0x10fa   :  { %2064 = vadd.xlane.f32.xlu1 %v2063_v7 }
0x10fb   :  { %v2066_v47 = vsel %vm177_vm1, %v2058_v45, 0.0  ;;  %v2059_v12 = vmul.f32 %v2055_v24, %v2055_v24 }
0x10fc   :  { %2067 = vadd.xlane.f32.xlu0 %v2066_v47 }
0x10fd   :  { %v2069_v49 = vsel %vm177_vm1, %v2059_v12, 0.0 }
0x10fe   :  { %2070 = vadd.xlane.f32.xlu1 %v2069_v49 }
0x1185   :  { %v2062_v53 = vpop.xlane.xlu0 %2061 }
0x1186   :  { %v2072_v54 = vmul.f32 0.015625, %v2062_v53 }
0x1187   :  { %v2065_v57 = vpop.xlane.xlu1 %2064 }
0x1188   :  { %v2076_v43 = vadd.f32 1e-05, %v2072_v54  ;;  %v2073_v44 = vmul.f32 0.015625, %v2065_v57 }
0x1189   :  { %v2068_v48 = vpop.xlane.xlu0 %2067 }
0x118a   :  { %2700 = vrsqrt.f32 %v2076_v43  ;;  %v2077_v59 = vadd.f32 1e-05, %v2073_v44  ;;  %v2074_v9 = vmul.f32 0.015625, %v2068_v48 }
0x118b   :  { %v2071_v62 = vpop.xlane.xlu1 %2070 }
0x118c   :  { %2702 = vrsqrt.f32 %v2077_v59  ;;  %v2078_v46 = vadd.f32 1e-05, %v2074_v9  ;;  %v2075_v63 = vmul.f32 0.015625, %v2071_v62 }
0x118e   :  { %2704 = vrsqrt.f32 %v2078_v46  ;;  %v2079_v2 = vadd.f32 1e-05, %v2075_v63 }
0x1190   :  { %2706 = vrsqrt.f32 %v2079_v2 }
0x1194   :  { %v2701_v3 = vpop.eup %2700 }
0x1195   :  { %v2084_v6 = vmul.f32 %v2701_v3, %v2052_v25 }
0x1196   :  { %v2703_v58 = vpop.eup %2702 }
0x1197   :  { %v2085_v8 = vmul.f32 %v2703_v58, %v2053_v23  ;;  %v2089_v11 = vmul.f32 %v2088_v56, %v2084_v6 }
0x1198   :  { %v2705_v1 = vpop.eup %2704 }
0x1199   :  { %v2086_v13 = vmul.f32 %v2705_v1, %v2054_v17  ;;  %v2090_v55 = vmul.f32 %v2088_v56, %v2085_v8  ;;  %v2094_v0 = vadd.f32 %v2093_v5, %v2089_v11 }
0x119a   :  { %v2707_v14 = vpop.eup %2706 }
0x119b   :  { %v2091_v16 = vmul.f32 %v2088_v56, %v2086_v13  ;;  %v2087_v60 = vmul.f32 %v2707_v14, %v2055_v24  ;;  %v2095_v21 = vadd.f32 %v2093_v5, %v2090_v55 }
0x119d   :  { %v2092_v4 = vmul.f32 %v2088_v56, %v2087_v60  ;;  %v2098_v61 = vpack.c.bf16 %v2095_v21, %v2094_v0  ;;  %v2096_v28 = vadd.f32 %v2093_v5, %v2091_v16 }
0x119f   :  { %2529 = vmatprep.mubr.msk.bf16.mxu0 %vm177_vm1, %v2098_v61  ;;  %v2097_v34 = vadd.f32 %v2093_v5, %v2092_v4 }
0x11a1   :  { %v2099_v36 = vpack.c.bf16 %v2097_v34, %v2096_v28 }
0x11a3   :  { %2530 = vmatmul.mubr.msk.bf16.vlgmr.msra.gmra.mrb[48].mxu0 %vm177_vm1, %v2099_v36 }
0x1276   :  { %v2531_v52 = vpop.f32.mrb[48].mxu0 }
0x1277   :  { %v2182_v50 = vadd.f32 %v2531_v52, %v2108_v38  ;;  %v2173_v20 = vpop.f32.mrb[49].mxu0 }
0x1278   :  { %v2174_v19 = vadd.f32 %v2173_v20, %v2108_v38  ;;  %v2532_v32 = vpop.f32.mrb[50].mxu0 }
0x1279   :  { %2190 = vst [vmem:[#allocation3 + $0x10] sm:$0xff] %v2182_v50  ;;  %v2185_v15 = vadd.f32 %v2532_v32, %v2108_v38  ;;  %v2176_v29 = vpop.f32.mrb[51].mxu0 }
0x127a   :  { %2188 = vst [vmem:[#allocation3] sm:$0xff] %v2174_v19  ;;  %v2177_v18 = vadd.f32 %v2176_v29, %v2108_v38 }
0x127b   :  { %2191 = vst [vmem:[#allocation3 + $0x18] sm:$0xff] %v2185_v15 }
0x127c   :  { %2189 = vst [vmem:[#allocation3 + $0x8] sm:$0xff] %v2177_v18 }
0x127d   :  { %2719 = shalt.err (!%p2716_p4)
}
0x127e   :  { %s2720_s29 = scalar_lea.hbm %s3344_s4, 512 }
0x127f   :  { %p2721_p5 = scmp.ne.s32.totalorder %s3344_s4, %s2720_s29  ;;  %p2724_p6 = scmp.lt.u32.totalorder %s2720_s29, %s3344_s4 }
0x1281   :  { %p2726_p7 = pnand %p2724_p6, %p2721_p5 }
0x1283   :  { %2729 = shalt.err (!%p2726_p7)
}
0x1284   :  { %s2743_s8 = smov 128   ;;  %s2744_s9 = smov 8  }
0x1285   :  { %2203 = dma.vmem_to_hbm [thread:$0]  %s2198_s1, 512, %s3344_s4, [#allocation4], %s2743_s8, %s2743_s8, %s2744_s9  }
0x1286   :  { %2730 = dma.done.wait [#allocation4], 512  }
0x1287   :  { %2731 = vsyncadd [#allocation4], 4294966784 }
0x1288   :  { %2207 = vsyncpa [#allocation4], 1 }

</bundles_post_ra>
